<compile_context>
chip_gen: v7x
topology: tpu7x:2x2x1
jax: 0.10.0
libtpu: 0.0.40
codegen_flags: <defaults>
</compile_context>

<pallas_src>
import functools

import jax
import jax.numpy as jnp
from jax.experimental import pallas as pl
from jax.experimental.pallas import tpu as pltpu


def pma_kernel(x_ref, q_ref, wk_ref, wv_ref, bk_ref, bv_ref, wo_ref, bo_ref,
               s_ref, g_ref, beta_ref, out_ref, ocat_ref, *, num_heads):
    """One tile of TB batch elements: MHA pooling + residual + LayerNorm."""
    TB, seq, dim = x_ref.shape
    num_seeds = q_ref.shape[0]
    dh = dim // num_heads

    # K/V projections as two big matmuls with M = TB*seq rows (MXU-friendly).
    x = x_ref[...].reshape(TB * seq, dim)
    k = (jnp.dot(x, wk_ref[...], preferred_element_type=jnp.float32)
         + bk_ref[...]).reshape(TB, seq, dim)
    v = (jnp.dot(x, wv_ref[...], preferred_element_type=jnp.float32)
         + bv_ref[...]).reshape(TB, seq, dim)

    # q is precomputed in the wrapper with the 1/sqrt(dh) scale folded in.
    # Broadcast once (hoisted out of the head loop).
    qb = jnp.broadcast_to(q_ref[...][None].astype(jnp.float32),
                          (TB, num_seeds, dim))

    # Per-head attention, batched over the TB batch elements.  Softmax
    # normalization is deferred to the (num_seeds, dh) head output; heads are
    # concatenated in a VMEM scratch so the output projection is one matmul.
    for h in range(num_heads):
        sl = slice(h * dh, (h + 1) * dh)
        scores = jnp.einsum('bqd,bkd->bqk', qb[:, :, sl], k[:, :, sl],
                            preferred_element_type=jnp.float32)
        m = jnp.max(scores, axis=-1, keepdims=True)
        p = jnp.exp(scores - m)
        denom = jnp.sum(p, axis=-1, keepdims=True)         # (TB, num_seeds, 1)
        oh = jnp.einsum('bqk,bkd->bqd', p, v[:, :, sl],
                        preferred_element_type=jnp.float32)
        # Exact reciprocal (approx=True would loosen the numerics); the
        # normalized tensor is only (TB, num_seeds, dh), not (.., seq).
        oh = oh * pl.reciprocal(denom, approx=False)
        ocat_ref[:, sl] = oh.reshape(TB * num_seeds, dh)

    # Single merged output projection: concat_h(head_h) @ Wo^T.
    proj = (jnp.dot(ocat_ref[...], wo_ref[...],
                    preferred_element_type=jnp.float32)
            + bo_ref[...]).reshape(TB, num_seeds, dim)

    # Residual (+ seed) and LayerNorm over the feature axis.
    res = proj + s_ref[...][None]
    mean = jnp.mean(res, axis=-1, keepdims=True)
    var = jnp.mean((res - mean) ** 2, axis=-1, keepdims=True)
    normed = (res - mean) * jax.lax.rsqrt(var + 1e-5)
    out_ref[...] = (normed * g_ref[...] + beta_ref[...]).astype(out_ref.dtype)


def pma_forward(X_sbd, seed, wq_t, wk_t, wv_t, bq, bk, bv, wo_t, bo,
                gamma, beta, *, num_heads, block_batch=8):
    """X_sbd: (seq, batch, dim). Returns (num_seeds, batch, dim)."""
    seq, batch, dim = X_sbd.shape
    num_seeds = seed.shape[0]
    dh = dim // num_heads
    scale = 1.0 / (dh ** 0.5)

    # Hoisted, batch-independent query projection with the attention scale
    # folded in (removes one matmul + one dim x dim weight DMA per grid step).
    q = (jnp.dot(seed, wq_t) + bq) * scale                  # (num_seeds, dim)

    # Tile TB batch elements per grid step; pad batch to a multiple of TB.
    TB = max(1, min(block_batch, batch))
    batch_p = ((batch + TB - 1) // TB) * TB

    # NOTE: for small `dim` a strided middle-axis DMA from (seq, batch, dim)
    # is inefficient, so we keep the explicit (batch, seq, dim) transpose here.
    x_bsd = jnp.transpose(X_sbd, (1, 0, 2))                 # (batch, seq, dim)
    if batch_p != batch:
        x_bsd = jnp.pad(x_bsd, ((0, batch_p - batch), (0, 0), (0, 0)))

    kernel = functools.partial(pma_kernel, num_heads=num_heads)
    full = lambda b: (0, 0)

    out_bsd = pl.pallas_call(
        kernel,
        out_shape=jax.ShapeDtypeStruct((batch_p, num_seeds, dim), X_sbd.dtype),
        grid_spec=pltpu.PrefetchScalarGridSpec(
            num_scalar_prefetch=0,
            grid=(batch_p // TB,),
            in_specs=[
                pl.BlockSpec((TB, seq, dim), lambda b: (b, 0, 0)),   # X tile
                pl.BlockSpec((num_seeds, dim), full),                # q (scaled)
                pl.BlockSpec((dim, dim), full),                      # Wk^T
                pl.BlockSpec((dim, dim), full),                      # Wv^T
                pl.BlockSpec((1, dim), full),                        # bk
                pl.BlockSpec((1, dim), full),                        # bv
                pl.BlockSpec((dim, dim), full),                      # Wo^T
                pl.BlockSpec((1, dim), full),                        # bo
                pl.BlockSpec((num_seeds, dim), full),                # seed (res.)
                pl.BlockSpec((1, dim), full),                        # ln gamma
                pl.BlockSpec((1, dim), full),                        # ln beta
            ],
            out_specs=pl.BlockSpec((TB, num_seeds, dim),
                                   lambda b: (b, 0, 0)),
            scratch_shapes=[
                pltpu.VMEM((TB * num_seeds, dim), jnp.float32),      # head concat
            ],
        ),
        compiler_params=pltpu.CompilerParams(
            dimension_semantics=("parallel",)),
    )(x_bsd, q, wk_t, wv_t, bk, bv, wo_t, bo, seed, gamma, beta)

    out_bsd = out_bsd[:batch]                               # drop batch padding
    return jnp.transpose(out_bsd, (1, 0, 2))                # (num_seeds, B, dim)


def pma_ref(X_sbd, seed, wq_t, wk_t, wv_t, bq, bk, bv, wo_t, bo,
            gamma, beta, *, num_heads):
    """Pure-JAX reference reproducing nn.MultiheadAttention + residual + LN."""
    seq, batch, dim = X_sbd.shape
    num_seeds = seed.shape[0]
    dh = dim // num_heads
    scale = 1.0 / (dh ** 0.5)

    S = jnp.broadcast_to(seed[:, None, :], (num_seeds, batch, dim))
    q = jnp.einsum('lbd,de->lbe', S, wq_t) + bq
    k = jnp.einsum('sbd,de->sbe', X_sbd, wk_t) + bk
    v = jnp.einsum('sbd,de->sbe', X_sbd, wv_t) + bv

    qh = q.reshape(num_seeds, batch, num_heads, dh).transpose(1, 2, 0, 3)
    kh = k.reshape(seq, batch, num_heads, dh).transpose(1, 2, 0, 3)
    vh = v.reshape(seq, batch, num_heads, dh).transpose(1, 2, 0, 3)

    scores = jnp.einsum('bhqd,bhkd->bhqk', qh, kh) * scale
    attn = jax.nn.softmax(scores, axis=-1)
    oh = jnp.einsum('bhqk,bhkd->bhqd', attn, vh)
    o = oh.transpose(2, 0, 1, 3).reshape(num_seeds, batch, dim)
    proj = jnp.einsum('lbd,de->lbe', o, wo_t) + bo

    res = proj + S
    mean = jnp.mean(res, axis=-1, keepdims=True)
    var = jnp.mean((res - mean) ** 2, axis=-1, keepdims=True)
    return (res - mean) / jnp.sqrt(var + 1e-5) * gamma + beta


if __name__ == "__main__":
    # Small shapes consistent with the module's forward: X is (seq, batch, dim).
    dim, num_heads, num_seeds = 32, 4, 8
    seq, batch = 16, 6          # batch=6 with block_batch=4 exercises padding

    key = jax.random.PRNGKey(0)
    ks = jax.random.split(key, 10)

    X = jax.random.normal(ks[0], (seq, batch, dim), jnp.float32)
    seed = jax.random.normal(ks[1], (num_seeds, dim), jnp.float32)

    # MultiheadAttention in/out projections (stored pre-transposed: y = x @ W^T).
    wq_t = jax.random.normal(ks[2], (dim, dim), jnp.float32) * (1.0 / dim ** 0.5)
    wk_t = jax.random.normal(ks[3], (dim, dim), jnp.float32) * (1.0 / dim ** 0.5)
    wv_t = jax.random.normal(ks[4], (dim, dim), jnp.float32) * (1.0 / dim ** 0.5)
    bq = jax.random.normal(ks[5], (1, dim), jnp.float32) * 0.02
    bk = jax.random.normal(ks[6], (1, dim), jnp.float32) * 0.02
    bv = jax.random.normal(ks[7], (1, dim), jnp.float32) * 0.02
    wo_t = jax.random.normal(ks[8], (dim, dim), jnp.float32) * (1.0 / dim ** 0.5)
    bo = jax.random.normal(ks[9], (1, dim), jnp.float32) * 0.02

    # LayerNorm default init: weight = 1, bias = 0.
    gamma = jnp.ones((1, dim), jnp.float32)
    beta = jnp.zeros((1, dim), jnp.float32)

    out = pma_forward(X, seed, wq_t, wk_t, wv_t, bq, bk, bv, wo_t, bo,
                      gamma, beta, num_heads=num_heads, block_batch=4)
    out = jax.block_until_ready(out)

    ref = pma_ref(X, seed, wq_t, wk_t, wv_t, bq, bk, bv, wo_t, bo,
                  gamma, beta, num_heads=num_heads)

    assert out.shape == (num_seeds, batch, dim), out.shape
    assert jnp.allclose(out, ref, atol=1e-4, rtol=1e-4), \
        f"max err {jnp.max(jnp.abs(out - ref))}"

    print("KERNEL_OK")
</pallas_src>

<mosaic_0001>
module attributes {stable_mosaic.version = 11 : i64} {
  func.func @pma_kernel(%arg0: i32, %arg1: memref<4x16x32xf32, #tpu.memory_space<vmem>>, %arg2: memref<8x32xf32, #tpu.memory_space<vmem>>, %arg3: memref<32x32xf32, #tpu.memory_space<vmem>>, %arg4: memref<32x32xf32, #tpu.memory_space<vmem>>, %arg5: memref<1x32xf32, #tpu.memory_space<vmem>>, %arg6: memref<1x32xf32, #tpu.memory_space<vmem>>, %arg7: memref<32x32xf32, #tpu.memory_space<vmem>>, %arg8: memref<1x32xf32, #tpu.memory_space<vmem>>, %arg9: memref<8x32xf32, #tpu.memory_space<vmem>>, %arg10: memref<1x32xf32, #tpu.memory_space<vmem>>, %arg11: memref<1x32xf32, #tpu.memory_space<vmem>>, %arg12: memref<4x8x32xf32, #tpu.memory_space<vmem>>, %arg13: memref<32x32xf32, #tpu.memory_space<vmem>>) attributes {dimension_semantics = [#tpu.dimension_semantics<parallel>], iteration_bounds = array<i64: 2>, scalar_prefetch = 0 : i64, scratch_operands = 1 : i64, tpu.core_type = #tpu.core_type<tc>, window_params = [{transform_indices = @transform_0, window_bounds = array<i64: 4, 16, 32>}, {pipeline_mode = #tpu.pipeline_mode<synchronous>, transform_indices = @transform_1, window_bounds = array<i64: 8, 32>}, {pipeline_mode = #tpu.pipeline_mode<synchronous>, transform_indices = @transform_2, window_bounds = array<i64: 32, 32>}, {pipeline_mode = #tpu.pipeline_mode<synchronous>, transform_indices = @transform_3, window_bounds = array<i64: 32, 32>}, {pipeline_mode = #tpu.pipeline_mode<synchronous>, transform_indices = @transform_4, window_bounds = array<i64: 1, 32>}, {pipeline_mode = #tpu.pipeline_mode<synchronous>, transform_indices = @transform_5, window_bounds = array<i64: 1, 32>}, {pipeline_mode = #tpu.pipeline_mode<synchronous>, transform_indices = @transform_6, window_bounds = array<i64: 32, 32>}, {pipeline_mode = #tpu.pipeline_mode<synchronous>, transform_indices = @transform_7, window_bounds = array<i64: 1, 32>}, {pipeline_mode = #tpu.pipeline_mode<synchronous>, transform_indices = @transform_8, window_bounds = array<i64: 8, 32>}, {pipeline_mode = #tpu.pipeline_mode<synchronous>, transform_indices = @transform_9, window_bounds = array<i64: 1, 32>}, {pipeline_mode = #tpu.pipeline_mode<synchronous>, transform_indices = @transform_10, window_bounds = array<i64: 1, 32>}, {transform_indices = @transform_11, window_bounds = array<i64: 4, 8, 32>}]} {
    %c0 = arith.constant 0 : index
    %c0_0 = arith.constant 0 : index
    %c0_1 = arith.constant 0 : index
    %0 = vector.load %arg1[%c0, %c0_0, %c0_1] : memref<4x16x32xf32, #tpu.memory_space<vmem>>, vector<4x16x32xf32>
    %1 = vector.shape_cast %0 : vector<4x16x32xf32> to vector<64x32xf32>
    %c0_2 = arith.constant 0 : index
    %c0_3 = arith.constant 0 : index
    %2 = vector.load %arg3[%c0_2, %c0_3] : memref<32x32xf32, #tpu.memory_space<vmem>>, vector<32x32xf32>
    %cst = arith.constant dense<0.000000e+00> : vector<64x32xf32>
    %3 = tpu.matmul %1, %2, %cst {dimension_numbers = #tpu.dot_dimension_numbers<[1], [0], [0], [1], [0, 0, 1, 1], [], []>} : vector<64x32xf32>, vector<32x32xf32>, vector<64x32xf32> -> vector<64x32xf32>
    %c0_4 = arith.constant 0 : index
    %c0_5 = arith.constant 0 : index
    %4 = vector.load %arg5[%c0_4, %c0_5] : memref<1x32xf32, #tpu.memory_space<vmem>>, vector<1x32xf32>
    %5 = vector.broadcast %4 : vector<1x32xf32> to vector<64x32xf32>
    %6 = arith.addf %3, %5 : vector<64x32xf32>
    %7 = vector.shape_cast %6 : vector<64x32xf32> to vector<4x16x32xf32>
    %c0_6 = arith.constant 0 : index
    %c0_7 = arith.constant 0 : index
    %8 = vector.load %arg4[%c0_6, %c0_7] : memref<32x32xf32, #tpu.memory_space<vmem>>, vector<32x32xf32>
    %cst_8 = arith.constant dense<0.000000e+00> : vector<64x32xf32>
    %9 = tpu.matmul %1, %8, %cst_8 {dimension_numbers = #tpu.dot_dimension_numbers<[1], [0], [0], [1], [0, 0, 1, 1], [], []>} : vector<64x32xf32>, vector<32x32xf32>, vector<64x32xf32> -> vector<64x32xf32>
    %c0_9 = arith.constant 0 : index
    %c0_10 = arith.constant 0 : index
    %10 = vector.load %arg6[%c0_9, %c0_10] : memref<1x32xf32, #tpu.memory_space<vmem>>, vector<1x32xf32>
    %11 = vector.broadcast %10 : vector<1x32xf32> to vector<64x32xf32>
    %12 = arith.addf %9, %11 : vector<64x32xf32>
    %13 = vector.shape_cast %12 : vector<64x32xf32> to vector<4x16x32xf32>
    %c0_11 = arith.constant 0 : index
    %c0_12 = arith.constant 0 : index
    %14 = vector.load %arg2[%c0_11, %c0_12] : memref<8x32xf32, #tpu.memory_space<vmem>>, vector<8x32xf32>
    %15 = vector.shape_cast %14 : vector<8x32xf32> to vector<1x8x32xf32>
    %16 = vector.shape_cast %15 : vector<1x8x32xf32> to vector<1x8x32xf32>
    %17 = vector.broadcast %16 : vector<1x8x32xf32> to vector<4x8x32xf32>
    %18 = vector.extract_strided_slice %17 {offsets = [0, 0, 0], sizes = [4, 8, 8], strides = [1, 1, 1]} : vector<4x8x32xf32> to vector<4x8x8xf32>
    %19 = vector.extract_strided_slice %7 {offsets = [0, 0, 0], sizes = [4, 16, 8], strides = [1, 1, 1]} : vector<4x16x32xf32> to vector<4x16x8xf32>
    "tpu.trace_start"() <{level = 10 : i32, message = "bqd,bkd->bqk"}> : () -> ()
    %cst_13 = arith.constant dense<0.000000e+00> : vector<4x8x16xf32>
    %20 = tpu.matmul %18, %19, %cst_13 {dimension_numbers = #tpu.dot_dimension_numbers<[2], [2], [1], [1], [0, 0, 0, 1, 1, 1], [0], [0]>} : vector<4x8x8xf32>, vector<4x16x8xf32>, vector<4x8x16xf32> -> vector<4x8x16xf32>
    "tpu.trace_stop"() : () -> ()
    %cst_14 = arith.constant dense<0xFF800000> : vector<4x8xf32>
    %21 = vector.multi_reduction <maximumf>, %20, %cst_14 [2] : vector<4x8x16xf32> to vector<4x8xf32>
    %22 = vector.shape_cast %21 : vector<4x8xf32> to vector<4x8x1xf32>
    %23 = vector.broadcast %22 : vector<4x8x1xf32> to vector<4x8x16xf32>
    %24 = arith.subf %20, %23 : vector<4x8x16xf32>
    %25 = math.exp %24 : vector<4x8x16xf32>
    %cst_15 = arith.constant dense<0.000000e+00> : vector<4x8xf32>
    %26 = vector.multi_reduction <add>, %25, %cst_15 [2] : vector<4x8x16xf32> to vector<4x8xf32>
    %27 = vector.shape_cast %26 : vector<4x8xf32> to vector<4x8x1xf32>
    %28 = vector.extract_strided_slice %13 {offsets = [0, 0, 0], sizes = [4, 16, 8], strides = [1, 1, 1]} : vector<4x16x32xf32> to vector<4x16x8xf32>
    "tpu.trace_start"() <{level = 10 : i32, message = "bqk,bkd->bqd"}> : () -> ()
    %cst_16 = arith.constant dense<0.000000e+00> : vector<4x8x8xf32>
    %29 = tpu.matmul %25, %28, %cst_16 {dimension_numbers = #tpu.dot_dimension_numbers<[2], [1], [1], [2], [0, 0, 0, 1, 1, 2], [0], [0]>} : vector<4x8x16xf32>, vector<4x16x8xf32>, vector<4x8x8xf32> -> vector<4x8x8xf32>
    "tpu.trace_stop"() : () -> ()
    %30 = tpu.reciprocal %27 : vector<4x8x1xf32> -> vector<4x8x1xf32>
    %31 = vector.broadcast %30 : vector<4x8x1xf32> to vector<4x8x8xf32>
    %32 = arith.mulf %29, %31 : vector<4x8x8xf32>
    %33 = vector.shape_cast %32 : vector<4x8x8xf32> to vector<32x8xf32>
    %c0_17 = arith.constant 0 : index
    %c0_18 = arith.constant 0 : index
    %34 = vector.load %arg13[%c0_17, %c0_18] : memref<32x32xf32, #tpu.memory_space<vmem>>, vector<32x8xf32>
    tpu.vector_store %arg13[%c0_17, %c0_18], %33 {strides = array<i32>} : memref<32x32xf32, #tpu.memory_space<vmem>>, vector<32x8xf32>,
    %35 = vector.extract_strided_slice %17 {offsets = [0, 0, 8], sizes = [4, 8, 8], strides = [1, 1, 1]} : vector<4x8x32xf32> to vector<4x8x8xf32>
    %36 = vector.extract_strided_slice %7 {offsets = [0, 0, 8], sizes = [4, 16, 8], strides = [1, 1, 1]} : vector<4x16x32xf32> to vector<4x16x8xf32>
    "tpu.trace_start"() <{level = 10 : i32, message = "bqd,bkd->bqk"}> : () -> ()
    %cst_19 = arith.constant dense<0.000000e+00> : vector<4x8x16xf32>
    %37 = tpu.matmul %35, %36, %cst_19 {dimension_numbers = #tpu.dot_dimension_numbers<[2], [2], [1], [1], [0, 0, 0, 1, 1, 1], [0], [0]>} : vector<4x8x8xf32>, vector<4x16x8xf32>, vector<4x8x16xf32> -> vector<4x8x16xf32>
    "tpu.trace_stop"() : () -> ()
    %cst_20 = arith.constant dense<0xFF800000> : vector<4x8xf32>
    %38 = vector.multi_reduction <maximumf>, %37, %cst_20 [2] : vector<4x8x16xf32> to vector<4x8xf32>
    %39 = vector.shape_cast %38 : vector<4x8xf32> to vector<4x8x1xf32>
    %40 = vector.broadcast %39 : vector<4x8x1xf32> to vector<4x8x16xf32>
    %41 = arith.subf %37, %40 : vector<4x8x16xf32>
    %42 = math.exp %41 : vector<4x8x16xf32>
    %cst_21 = arith.constant dense<0.000000e+00> : vector<4x8xf32>
    %43 = vector.multi_reduction <add>, %42, %cst_21 [2] : vector<4x8x16xf32> to vector<4x8xf32>
    %44 = vector.shape_cast %43 : vector<4x8xf32> to vector<4x8x1xf32>
    %45 = vector.extract_strided_slice %13 {offsets = [0, 0, 8], sizes = [4, 16, 8], strides = [1, 1, 1]} : vector<4x16x32xf32> to vector<4x16x8xf32>
    "tpu.trace_start"() <{level = 10 : i32, message = "bqk,bkd->bqd"}> : () -> ()
    %cst_22 = arith.constant dense<0.000000e+00> : vector<4x8x8xf32>
    %46 = tpu.matmul %42, %45, %cst_22 {dimension_numbers = #tpu.dot_dimension_numbers<[2], [1], [1], [2], [0, 0, 0, 1, 1, 2], [0], [0]>} : vector<4x8x16xf32>, vector<4x16x8xf32>, vector<4x8x8xf32> -> vector<4x8x8xf32>
    "tpu.trace_stop"() : () -> ()
    %47 = tpu.reciprocal %44 : vector<4x8x1xf32> -> vector<4x8x1xf32>
    %48 = vector.broadcast %47 : vector<4x8x1xf32> to vector<4x8x8xf32>
    %49 = arith.mulf %46, %48 : vector<4x8x8xf32>
    %50 = vector.shape_cast %49 : vector<4x8x8xf32> to vector<32x8xf32>
    %c0_23 = arith.constant 0 : index
    %c8 = arith.constant 8 : index
    %51 = vector.load %arg13[%c0_23, %c8] : memref<32x32xf32, #tpu.memory_space<vmem>>, vector<32x8xf32>
    tpu.vector_store %arg13[%c0_23, %c8], %50 {strides = array<i32>} : memref<32x32xf32, #tpu.memory_space<vmem>>, vector<32x8xf32>,
    %52 = vector.extract_strided_slice %17 {offsets = [0, 0, 16], sizes = [4, 8, 8], strides = [1, 1, 1]} : vector<4x8x32xf32> to vector<4x8x8xf32>
    %53 = vector.extract_strided_slice %7 {offsets = [0, 0, 16], sizes = [4, 16, 8], strides = [1, 1, 1]} : vector<4x16x32xf32> to vector<4x16x8xf32>
    "tpu.trace_start"() <{level = 10 : i32, message = "bqd,bkd->bqk"}> : () -> ()
    %cst_24 = arith.constant dense<0.000000e+00> : vector<4x8x16xf32>
    %54 = tpu.matmul %52, %53, %cst_24 {dimension_numbers = #tpu.dot_dimension_numbers<[2], [2], [1], [1], [0, 0, 0, 1, 1, 1], [0], [0]>} : vector<4x8x8xf32>, vector<4x16x8xf32>, vector<4x8x16xf32> -> vector<4x8x16xf32>
    "tpu.trace_stop"() : () -> ()
    %cst_25 = arith.constant dense<0xFF800000> : vector<4x8xf32>
    %55 = vector.multi_reduction <maximumf>, %54, %cst_25 [2] : vector<4x8x16xf32> to vector<4x8xf32>
    %56 = vector.shape_cast %55 : vector<4x8xf32> to vector<4x8x1xf32>
    %57 = vector.broadcast %56 : vector<4x8x1xf32> to vector<4x8x16xf32>
    %58 = arith.subf %54, %57 : vector<4x8x16xf32>
    %59 = math.exp %58 : vector<4x8x16xf32>
    %cst_26 = arith.constant dense<0.000000e+00> : vector<4x8xf32>
    %60 = vector.multi_reduction <add>, %59, %cst_26 [2] : vector<4x8x16xf32> to vector<4x8xf32>
    %61 = vector.shape_cast %60 : vector<4x8xf32> to vector<4x8x1xf32>
    %62 = vector.extract_strided_slice %13 {offsets = [0, 0, 16], sizes = [4, 16, 8], strides = [1, 1, 1]} : vector<4x16x32xf32> to vector<4x16x8xf32>
    "tpu.trace_start"() <{level = 10 : i32, message = "bqk,bkd->bqd"}> : () -> ()
    %cst_27 = arith.constant dense<0.000000e+00> : vector<4x8x8xf32>
    %63 = tpu.matmul %59, %62, %cst_27 {dimension_numbers = #tpu.dot_dimension_numbers<[2], [1], [1], [2], [0, 0, 0, 1, 1, 2], [0], [0]>} : vector<4x8x16xf32>, vector<4x16x8xf32>, vector<4x8x8xf32> -> vector<4x8x8xf32>
    "tpu.trace_stop"() : () -> ()
    %64 = tpu.reciprocal %61 : vector<4x8x1xf32> -> vector<4x8x1xf32>
    %65 = vector.broadcast %64 : vector<4x8x1xf32> to vector<4x8x8xf32>
    %66 = arith.mulf %63, %65 : vector<4x8x8xf32>
    %67 = vector.shape_cast %66 : vector<4x8x8xf32> to vector<32x8xf32>
    %c0_28 = arith.constant 0 : index
    %c16 = arith.constant 16 : index
    %68 = vector.load %arg13[%c0_28, %c16] : memref<32x32xf32, #tpu.memory_space<vmem>>, vector<32x8xf32>
    tpu.vector_store %arg13[%c0_28, %c16], %67 {strides = array<i32>} : memref<32x32xf32, #tpu.memory_space<vmem>>, vector<32x8xf32>,
    %69 = vector.extract_strided_slice %17 {offsets = [0, 0, 24], sizes = [4, 8, 8], strides = [1, 1, 1]} : vector<4x8x32xf32> to vector<4x8x8xf32>
    %70 = vector.extract_strided_slice %7 {offsets = [0, 0, 24], sizes = [4, 16, 8], strides = [1, 1, 1]} : vector<4x16x32xf32> to vector<4x16x8xf32>
    "tpu.trace_start"() <{level = 10 : i32, message = "bqd,bkd->bqk"}> : () -> ()
    %cst_29 = arith.constant dense<0.000000e+00> : vector<4x8x16xf32>
    %71 = tpu.matmul %69, %70, %cst_29 {dimension_numbers = #tpu.dot_dimension_numbers<[2], [2], [1], [1], [0, 0, 0, 1, 1, 1], [0], [0]>} : vector<4x8x8xf32>, vector<4x16x8xf32>, vector<4x8x16xf32> -> vector<4x8x16xf32>
    "tpu.trace_stop"() : () -> ()
    %cst_30 = arith.constant dense<0xFF800000> : vector<4x8xf32>
    %72 = vector.multi_reduction <maximumf>, %71, %cst_30 [2] : vector<4x8x16xf32> to vector<4x8xf32>
    %73 = vector.shape_cast %72 : vector<4x8xf32> to vector<4x8x1xf32>
    %74 = vector.broadcast %73 : vector<4x8x1xf32> to vector<4x8x16xf32>
    %75 = arith.subf %71, %74 : vector<4x8x16xf32>
    %76 = math.exp %75 : vector<4x8x16xf32>
    %cst_31 = arith.constant dense<0.000000e+00> : vector<4x8xf32>
    %77 = vector.multi_reduction <add>, %76, %cst_31 [2] : vector<4x8x16xf32> to vector<4x8xf32>
    %78 = vector.shape_cast %77 : vector<4x8xf32> to vector<4x8x1xf32>
    %79 = vector.extract_strided_slice %13 {offsets = [0, 0, 24], sizes = [4, 16, 8], strides = [1, 1, 1]} : vector<4x16x32xf32> to vector<4x16x8xf32>
    "tpu.trace_start"() <{level = 10 : i32, message = "bqk,bkd->bqd"}> : () -> ()
    %cst_32 = arith.constant dense<0.000000e+00> : vector<4x8x8xf32>
    %80 = tpu.matmul %76, %79, %cst_32 {dimension_numbers = #tpu.dot_dimension_numbers<[2], [1], [1], [2], [0, 0, 0, 1, 1, 2], [0], [0]>} : vector<4x8x16xf32>, vector<4x16x8xf32>, vector<4x8x8xf32> -> vector<4x8x8xf32>
    "tpu.trace_stop"() : () -> ()
    %81 = tpu.reciprocal %78 : vector<4x8x1xf32> -> vector<4x8x1xf32>
    %82 = vector.broadcast %81 : vector<4x8x1xf32> to vector<4x8x8xf32>
    %83 = arith.mulf %80, %82 : vector<4x8x8xf32>
    %84 = vector.shape_cast %83 : vector<4x8x8xf32> to vector<32x8xf32>
    %c0_33 = arith.constant 0 : index
    %c24 = arith.constant 24 : index
    %85 = vector.load %arg13[%c0_33, %c24] : memref<32x32xf32, #tpu.memory_space<vmem>>, vector<32x8xf32>
    tpu.vector_store %arg13[%c0_33, %c24], %84 {strides = array<i32>} : memref<32x32xf32, #tpu.memory_space<vmem>>, vector<32x8xf32>,
    %c0_34 = arith.constant 0 : index
    %c0_35 = arith.constant 0 : index
    %86 = vector.load %arg13[%c0_34, %c0_35] : memref<32x32xf32, #tpu.memory_space<vmem>>, vector<32x32xf32>
    %c0_36 = arith.constant 0 : index
    %c0_37 = arith.constant 0 : index
    %87 = vector.load %arg7[%c0_36, %c0_37] : memref<32x32xf32, #tpu.memory_space<vmem>>, vector<32x32xf32>
    %cst_38 = arith.constant dense<0.000000e+00> : vector<32x32xf32>
    %88 = tpu.matmul %86, %87, %cst_38 {dimension_numbers = #tpu.dot_dimension_numbers<[1], [0], [0], [1], [0, 0, 1, 1], [], []>} : vector<32x32xf32>, vector<32x32xf32>, vector<32x32xf32> -> vector<32x32xf32>
    %c0_39 = arith.constant 0 : index
    %c0_40 = arith.constant 0 : index
    %89 = vector.load %arg8[%c0_39, %c0_40] : memref<1x32xf32, #tpu.memory_space<vmem>>, vector<1x32xf32>
    %90 = vector.broadcast %89 : vector<1x32xf32> to vector<32x32xf32>
    %91 = arith.addf %88, %90 : vector<32x32xf32>
    %92 = vector.shape_cast %91 : vector<32x32xf32> to vector<4x8x32xf32>
    %c0_41 = arith.constant 0 : index
    %c0_42 = arith.constant 0 : index
    %93 = vector.load %arg9[%c0_41, %c0_42] : memref<8x32xf32, #tpu.memory_space<vmem>>, vector<8x32xf32>
    %94 = vector.shape_cast %93 : vector<8x32xf32> to vector<1x8x32xf32>
    %95 = vector.broadcast %94 : vector<1x8x32xf32> to vector<4x8x32xf32>
    %96 = arith.addf %92, %95 : vector<4x8x32xf32>
    %cst_43 = arith.constant dense<0.000000e+00> : vector<4x8xf32>
    %97 = vector.multi_reduction <add>, %96, %cst_43 [2] : vector<4x8x32xf32> to vector<4x8xf32>
    %98 = vector.shape_cast %97 : vector<4x8xf32> to vector<4x8x1xf32>
    %cst_44 = arith.constant 3.200000e+01 : f32
    %99 = vector.broadcast %cst_44 : f32 to vector<4x8x1xf32>
    %100 = arith.divf %98, %99 : vector<4x8x1xf32>
    %101 = vector.broadcast %100 : vector<4x8x1xf32> to vector<4x8x32xf32>
    %102 = arith.subf %96, %101 : vector<4x8x32xf32>
    %103 = arith.mulf %102, %102 : vector<4x8x32xf32>
    %cst_45 = arith.constant dense<0.000000e+00> : vector<4x8xf32>
    %104 = vector.multi_reduction <add>, %103, %cst_45 [2] : vector<4x8x32xf32> to vector<4x8xf32>
    %105 = vector.shape_cast %104 : vector<4x8xf32> to vector<4x8x1xf32>
    %cst_46 = arith.constant 3.200000e+01 : f32
    %106 = vector.broadcast %cst_46 : f32 to vector<4x8x1xf32>
    %107 = arith.divf %105, %106 : vector<4x8x1xf32>
    %108 = vector.broadcast %100 : vector<4x8x1xf32> to vector<4x8x32xf32>
    %109 = arith.subf %96, %108 : vector<4x8x32xf32>
    %cst_47 = arith.constant 9.99999974E-6 : f32
    %110 = vector.broadcast %cst_47 : f32 to vector<4x8x1xf32>
    %111 = arith.addf %107, %110 : vector<4x8x1xf32>
    %112 = math.rsqrt %111 : vector<4x8x1xf32>
    %113 = vector.broadcast %112 : vector<4x8x1xf32> to vector<4x8x32xf32>
    %114 = arith.mulf %109, %113 : vector<4x8x32xf32>
    %c0_48 = arith.constant 0 : index
    %c0_49 = arith.constant 0 : index
    %115 = vector.load %arg10[%c0_48, %c0_49] : memref<1x32xf32, #tpu.memory_space<vmem>>, vector<1x32xf32>
    %116 = vector.shape_cast %115 : vector<1x32xf32> to vector<1x1x32xf32>
    %117 = vector.broadcast %116 : vector<1x1x32xf32> to vector<4x8x32xf32>
    %118 = arith.mulf %114, %117 : vector<4x8x32xf32>
    %c0_50 = arith.constant 0 : index
    %c0_51 = arith.constant 0 : index
    %119 = vector.load %arg11[%c0_50, %c0_51] : memref<1x32xf32, #tpu.memory_space<vmem>>, vector<1x32xf32>
    %120 = vector.shape_cast %119 : vector<1x32xf32> to vector<1x1x32xf32>
    %121 = vector.broadcast %120 : vector<1x1x32xf32> to vector<4x8x32xf32>
    %122 = arith.addf %118, %121 : vector<4x8x32xf32>
    %c0_52 = arith.constant 0 : index
    %c0_53 = arith.constant 0 : index
    %c0_54 = arith.constant 0 : index
    %123 = vector.load %arg12[%c0_52, %c0_53, %c0_54] : memref<4x8x32xf32, #tpu.memory_space<vmem>>, vector<4x8x32xf32>
    tpu.vector_store %arg12[%c0_52, %c0_53, %c0_54], %122 {strides = array<i32>} : memref<4x8x32xf32, #tpu.memory_space<vmem>>, vector<4x8x32xf32>,
    return
  }
  func.func @transform_0(%arg0: i32) -> (i32, i32, i32) {
    %c0_i32 = arith.constant 0 : i32
    %c0_i32_0 = arith.constant 0 : i32
    %c0_i32_1 = arith.constant 0 : i32
    return %arg0, %c0_i32, %c0_i32_0 : i32, i32, i32
  }
  func.func @transform_1(%arg0: i32) -> (i32, i32) {
    %c0_i32 = arith.constant 0 : i32
    %c0_i32_0 = arith.constant 0 : i32
    %c0_i32_1 = arith.constant 0 : i32
    return %c0_i32, %c0_i32_0 : i32, i32
  }
  func.func @transform_2(%arg0: i32) -> (i32, i32) {
    %c0_i32 = arith.constant 0 : i32
    %c0_i32_0 = arith.constant 0 : i32
    %c0_i32_1 = arith.constant 0 : i32
    return %c0_i32, %c0_i32_0 : i32, i32
  }
  func.func @transform_3(%arg0: i32) -> (i32, i32) {
    %c0_i32 = arith.constant 0 : i32
    %c0_i32_0 = arith.constant 0 : i32
    %c0_i32_1 = arith.constant 0 : i32
    return %c0_i32, %c0_i32_0 : i32, i32
  }
  func.func @transform_4(%arg0: i32) -> (i32, i32) {
    %c0_i32 = arith.constant 0 : i32
    %c0_i32_0 = arith.constant 0 : i32
    %c0_i32_1 = arith.constant 0 : i32
    return %c0_i32, %c0_i32_0 : i32, i32
  }
  func.func @transform_5(%arg0: i32) -> (i32, i32) {
    %c0_i32 = arith.constant 0 : i32
    %c0_i32_0 = arith.constant 0 : i32
    %c0_i32_1 = arith.constant 0 : i32
    return %c0_i32, %c0_i32_0 : i32, i32
  }
  func.func @transform_6(%arg0: i32) -> (i32, i32) {
    %c0_i32 = arith.constant 0 : i32
    %c0_i32_0 = arith.constant 0 : i32
    %c0_i32_1 = arith.constant 0 : i32
    return %c0_i32, %c0_i32_0 : i32, i32
  }
  func.func @transform_7(%arg0: i32) -> (i32, i32) {
    %c0_i32 = arith.constant 0 : i32
    %c0_i32_0 = arith.constant 0 : i32
    %c0_i32_1 = arith.constant 0 : i32
    return %c0_i32, %c0_i32_0 : i32, i32
  }
  func.func @transform_8(%arg0: i32) -> (i32, i32) {
    %c0_i32 = arith.constant 0 : i32
    %c0_i32_0 = arith.constant 0 : i32
    %c0_i32_1 = arith.constant 0 : i32
    return %c0_i32, %c0_i32_0 : i32, i32
  }
  func.func @transform_9(%arg0: i32) -> (i32, i32) {
    %c0_i32 = arith.constant 0 : i32
    %c0_i32_0 = arith.constant 0 : i32
    %c0_i32_1 = arith.constant 0 : i32
    return %c0_i32, %c0_i32_0 : i32, i32
  }
  func.func @transform_10(%arg0: i32) -> (i32, i32) {
    %c0_i32 = arith.constant 0 : i32
    %c0_i32_0 = arith.constant 0 : i32
    %c0_i32_1 = arith.constant 0 : i32
    return %c0_i32, %c0_i32_0 : i32, i32
  }
  func.func @transform_11(%arg0: i32) -> (i32, i32, i32) {
    %c0_i32 = arith.constant 0 : i32
    %c0_i32_0 = arith.constant 0 : i32
    %c0_i32_1 = arith.constant 0 : i32
    return %arg0, %c0_i32, %c0_i32_0 : i32, i32, i32
  }
}

</mosaic_0001>

<bundles_post_ra>
// kernel: tpu_custom_call.1
= control target key start
LH: loop header
LB: loop body
LE: loop exit
PB: predicated region body
PF: predicated region fallthrough
CT: control target
= control target key end

     0   :  { %s5758_s0 = inlined_call_operand.hbm [shape: f32[8,16,32], index: 0, kind: input, shape index: {}]   ;;  %s5759_s1 = inlined_call_operand.hbm [shape: f32[8,32], index: 1, kind: input, shape index: {}]   ;;  %s5760_s2 = inlined_call_operand.hbm [shape: f32[32,32], index: 2, kind: input, shape index: {}]   ;;  %s5761_s3 = inlined_call_operand.hbm [shape: f32[32,32], index: 3, kind: input, shape index: {}]   ;;  %s5762_s4 = inlined_call_operand.vmem [shape: f32[1,32], index: 4, kind: input, shape index: {}]   ;;  %s5763_s5 = inlined_call_operand.vmem [shape: f32[1,32], index: 5, kind: input, shape index: {}]   ;;  %s5764_s6 = inlined_call_operand.hbm [shape: f32[32,32], index: 6, kind: input, shape index: {}]   ;;  %s5765_s7 = inlined_call_operand.vmem [shape: f32[1,32], index: 7, kind: input, shape index: {}]   ;;  %s5766_s8 = inlined_call_operand.vmem [shape: f32[8,32], index: 8, kind: input, shape index: {}]   ;;  %s5767_s9 = inlined_call_operand.vmem [shape: f32[1,32], index: 9, kind: input, shape index: {}]   ;;  %s5768_s10 = inlined_call_operand.vmem [shape: f32[1,32], index: 10, kind: input, shape index: {}]   ;;  %s5769_s11 = inlined_call_operand.hbm [shape: f32[8,8,32], index: 11, kind: output, shape index: {}]  }
   0x1   :  { %5776 = sst [smem:[#allocation19_spill]] %s5759_s1 }
   0x2   :  { %5777 = sst [smem:[#allocation20_spill]] %s5761_s3 }
   0x3   :  { %5778 = sst [smem:[#allocation21_spill]] %s5769_s11 }
   0x4   :  { %16 = vsyncpa [#allocation4], 0 }
   0x5   :  { %18 = vsyncpa [#allocation4 + $0x1], 0 }
   0x6   :  { %19 = vsyncpa [#allocation7], 0 }
   0x7   :  { %20 = vsyncpa [#allocation10], 0 }
   0x8   :  { %21 = vsyncpa [#allocation5], 0 }
   0x9   :  { %23 = vsyncpa [#allocation5 + $0x1], 0  ;;  %s5047_s17 = smov 0   ;;  %s5049_s18 = smov 0  }
   0xa   :  { %s5051_s19 = smov 0   ;;  %s5053_s20 = smov 0  }
   0xb LB: > { %5779 = sst [smem:[#allocation17_spill]] %s4955_s17  ;;  %s5068_s21 = sadd.s32 4294967295, %s4967_s20   ;;  %s4967_s20 = sphi %s5053_s20, %s5807_s20   ;;  %s4963_s19 = sphi %s5051_s19, %s5806_s19   ;;  %s4959_s18 = sphi %s5049_s18, %s5805_s18   ;;  %s4955_s17 = sphi %s5047_s17, %s5804_s17  }
   0xc   : > { %s3799_s22 = sadd.s32 4294967294, %s4967_s20   ;;  %p49_p0 = scmp.ne.s32.totalorder %s4959_s18, %s4955_s17 }
   0xd   : > { %p5771_p1 = scmp.eq.s32.totalorder %s5068_s21, 0  ;;  %p289_p3 = scmp.eq.s32.totalorder %s3799_s22, 1 }
   0xe   : > { %p3800_p5 = scmp.ge.s32.totalorder %s4967_s20, 1  ;;  %p296_p7 = scmp.lt.s32.totalorder %s4967_s20, 3 }
   0xf   : > { %p5077_p4 = por %p5771_p1, %p49_p0  ;;  %p5082_p6 = por %p289_p3, %p49_p0 }
  0x10   : > { %p5087_p8 = pnand %p3800_p5, %p296_p7  ;;  %s4969_s26 = smov [#allocation6]  }
  0x11   : > { %s5780_s23 = scalar_select %p5077_p4, 1, 0 }
  0x12   : > { %s5781_s24 = scalar_select %p5082_p6, 1, 0 }
  0x13   : > { %s5783_s25 = scalar_select %p5087_p8, 1, 0 }
  0x14   : > { %5782 = sst [smem:[#allocation18_spill]] %s5781_s24  ;;  %s309_s27 = sshll.u32 %s4969_s26, 4  ;;  %s310_s27 = int_to_ptr.vmem [resolvable:$true] %s309_s27 }
  0x15   : > { %p4480_p10 = pneg %p5087_p8  ;;  %s4970_s29 = smov [#allocation9]  }
  0x16   : > { %s332_s30 = sshll.u32 %s4970_s29, 4  ;;  %s4971_s12 = smov [#allocation8]   ;;  %s5100_s30 = int_to_ptr.vmem [resolvable:$true] %s332_s30 }
  0x17   : > { %p5096_p11 = pnand %p4480_p10, %p5771_p1  ;;  %s5102_s13 = sshll.u32 %s4971_s12, 4  ;;  %s320_s13 = int_to_ptr.vmem [resolvable:$true] %s5102_s13 }
  0x18   : > { %s5785_s1 = sld [smem:[#allocation19_spill]] }
  0x19   : > { %p5112_p13 = pneg %p5096_p11 }
  0x1e   : > { %s4751_s16 = scalar_lea.hbm %s5785_s1, 128 }
  0x1f   : > { %p4752_p12 = scmp.ne.s32.totalorder %s5785_s1, %s4751_s16  ;;  %p4758_p5 = scmp.lt.u32.totalorder %s4751_s16, %s5785_s1 }
  0x21   : > { %p4754_p0 = pnand %p5112_p13, %p4752_p12 }
  0x23   : > { %p4755_p3 = pneg %p4754_p0 }
  0x25   : > { %p4760_p7 = pnand %p4758_p5, %p4755_p3 }
  0x27   : > { %4763 = shalt.err (!%p4760_p7)
}
  0x28   : > { %s4764_s14 = scalar_lea.vmem %s310_s27, 128  ;;  %p4772_p2 = scmp.lt.s32.totalorder %s310_s27, %s310_s27 }
  0x29   : > { %p4765_p10 = scmp.ne.s32.totalorder %s310_s27, %s4764_s14  ;;  %p4773_p6 = scmp.lt.s32.totalorder %s4764_s14, %s4764_s14 }
  0x2b   : > { %p4767_p9 = pnand %p4765_p10, %p5112_p13  ;;  %p4774_p4 = por %p4773_p6, %p4772_p2 }
  0x2d   : > { %p4768_p1 = pneg %p4767_p9 }
  0x2f   : > { %p4775_p8 = pnand %p4774_p4, %p4768_p1 }
  0x31   : > { %4778 = shalt.err (!%p4775_p8)
}
  0x32   : > { %4483 = dma.hbm_to_vmem [thread:$0]  (!%p5096_p11), %s5785_s1, 128, %s310_s27, [#allocation7]  }
  0x33   : > { %s5787_s3 = sld [smem:[#allocation20_spill]] }
  0x39   : > { %s4779_s29 = scalar_lea.hbm %s5787_s3, 512 }
  0x3a   : > { %p4780_p9 = scmp.ne.s32.totalorder %s5787_s3, %s4779_s29  ;;  %p4786_p1 = scmp.lt.u32.totalorder %s4779_s29, %s5787_s3 }
  0x3c   : > { %p4782_p12 = pnand %p4780_p9, %p5112_p13 }
  0x3e   : > { %p4783_p2 = pneg %p4782_p12 }
  0x40   : > { %p4788_p4 = pnand %p4786_p1, %p4783_p2 }
  0x42   : > { %4791 = shalt.err (!%p4788_p4)
}
  0x43   : > { %s4792_s27 = scalar_lea.vmem %s5100_s30, 512  ;;  %p4800_p3 = scmp.lt.s32.totalorder %s5100_s30, %s5100_s30 }
  0x44   : > { %p4793_p6 = scmp.ne.s32.totalorder %s5100_s30, %s4792_s27  ;;  %p4801_p5 = scmp.lt.s32.totalorder %s4792_s27, %s4792_s27 }
  0x46   : > { %p4795_p8 = pnand %p4793_p6, %p5112_p13  ;;  %p4802_p7 = por %p4801_p5, %p4800_p3 }
  0x48   : > { %p4796_p0 = pneg %p4795_p8 }
  0x4a   : > { %p4803_p10 = pnand %p4802_p7, %p4796_p0 }
  0x4c   : > { %4806 = shalt.err (!%p4803_p10)
}
  0x4d   : > { %s4972_s17 = smov 128   ;;  %s4973_s11 = smov 8  }
  0x4e   : > { %4489 = dma.hbm_to_vmem [thread:$0]  (!%p5096_p11), %s5787_s3, 512, %s5100_s30, [#allocation10], %s4972_s17, %s4972_s17, %s4973_s11  }
  0x4f   : > { %s4807_s29 = scalar_lea.hbm %s5760_s2, 512 }
  0x50   : > { %p4808_p9 = scmp.ne.s32.totalorder %s5760_s2, %s4807_s29  ;;  %p4814_p1 = scmp.lt.u32.totalorder %s4807_s29, %s5760_s2 }
  0x52   : > { %p4810_p12 = pnand %p4808_p9, %p5112_p13 }
  0x54   : > { %p4811_p2 = pneg %p4810_p12 }
  0x56   : > { %p4816_p4 = pnand %p4814_p1, %p4811_p2 }
  0x58   : > { %4819 = shalt.err (!%p4816_p4)
}
  0x59   : > { %s4820_s15 = scalar_lea.vmem %s320_s13, 512  ;;  %p4828_p3 = scmp.lt.s32.totalorder %s320_s13, %s320_s13 }
  0x5a   : > { %p4821_p6 = scmp.ne.s32.totalorder %s320_s13, %s4820_s15  ;;  %p4829_p5 = scmp.lt.s32.totalorder %s4820_s15, %s4820_s15 }
  0x5c   : > { %p4823_p8 = pnand %p4821_p6, %p5112_p13  ;;  %p4830_p7 = por %p4829_p5, %p4828_p3 }
  0x5e   : > { %p4824_p0 = pneg %p4823_p8 }
  0x60   : > { %p4831_p10 = pnand %p4830_p7, %p4824_p0 }
  0x62   : > { %4834 = shalt.err (!%p4831_p10)
}
  0x63   : > { %4486 = dma.hbm_to_vmem [thread:$0]  (!%p5096_p11), %s5760_s2, 512, %s320_s13, [#allocation7], %s4972_s17, %s4972_s17, %s4973_s11  }
  0x64   : > { %s4974_s22 = smov [#allocation11]   ;;  %s4835_s12 = scalar_lea.hbm %s5764_s6, 512 }
  0x65   : > { %s351_s16 = sshll.u32 %s4974_s22, 4  ;;  %p4836_p9 = scmp.ne.s32.totalorder %s5764_s6, %s4835_s12  ;;  %s352_s16 = int_to_ptr.vmem [resolvable:$true] %s351_s16 }
  0x66   : > { %p4842_p1 = scmp.lt.u32.totalorder %s4835_s12, %s5764_s6 }
  0x67   : > { %p4838_p12 = pnand %p4836_p9, %p5112_p13 }
  0x69   : > { %p4839_p2 = pneg %p4838_p12 }
  0x6b   : > { %p4844_p4 = pnand %p4842_p1, %p4839_p2 }
  0x6d   : > { %4847 = shalt.err (!%p4844_p4)
}
  0x6e   : > { %s4848_s13 = scalar_lea.vmem %s352_s16, 512  ;;  %p4856_p3 = scmp.lt.s32.totalorder %s352_s16, %s352_s16 }
  0x6f   : > { %p4849_p6 = scmp.ne.s32.totalorder %s352_s16, %s4848_s13  ;;  %p4857_p5 = scmp.lt.s32.totalorder %s4848_s13, %s4848_s13 }
  0x71   : > { %p4851_p8 = pnand %p4849_p6, %p5112_p13  ;;  %p4858_p7 = por %p4857_p5, %p4856_p3 }
  0x73   : > { %p4852_p0 = pneg %p4851_p8 }
  0x75   : > { %p4859_p10 = pnand %p4858_p7, %p4852_p0 }
  0x77   : > { %4862 = shalt.err (!%p4859_p10)
}
  0x78   : > { %4492 = dma.hbm_to_vmem [thread:$0]  (!%p5096_p11), %s5764_s6, 512, %s352_s16, [#allocation10], %s4972_s17, %s4972_s17, %s4973_s11  }
  0x79   : > { %s5198_s24 = sadd.s32 1, %s4967_s20   ;;  %s36_s28 = sadd.s32 1, %s4963_s19 }
  0x7a   : > { %s33_s30 = ssub.s32 %s4967_s20, %s5198_s24  ;;  %p43_p13 = scmp.ne.s32.totalorder %s4963_s19, %s4959_s18 }
  0x7b   : > { %p34_p9 = scmp.eq.s32.totalorder %s33_s30, 0  ;;  %p44_p12 = scmp.eq.s32.totalorder %s4967_s20, 0 }
  0x7c   : > { %p5788_p2 = scmp.eq.s32.totalorder %s5068_s21, 1  ;;  %p4505_p4 = scmp.lt.s32.totalorder %s4967_s20, 2 }
  0x7d   : > { %s5214_s26 = scalar_select %p34_p9, %s4963_s19, %s36_s28  }
  0x7e   : > { %p5208_p1 = por %p5788_p2, %p43_p13  ;;  %p45_p6 = por %p44_p12, %p43_p13 }
  0x7f   : > { %s377_s29 = sand.u32 1, %s4963_s19   ;;  %s3912_s16 = sshll.u32 %s4967_s20, 10 }
  0x80   : > { %s3806_s12 = sshll.u32 %s377_s29, 6  ;;  %s5221_s15 = scalar_lea.hbm %s5758_s0, %s3912_s16 }
  0x81   : > { %s381_s13 = scalar_lea.vmem [#allocation3], %s3806_s12  ;;  %p5225_p11 = pnand %p4505_p4, %p45_p6 }
  0x82   : > { %s389_s3 = sshll.u32 %s381_s13, 4  ;;  %s5229_s28 = scalar_lea.sflag [#allocation4], %s377_s29  ;;  %s5223_s3 = int_to_ptr.vmem [resolvable:$true] %s389_s3 }
  0x83   : > { %s4863_s30 = scalar_lea.hbm %s5221_s15, 1024  ;;  %p4865_p0 = pneg %p5225_p11 }
  0x84   : > { %p4864_p8 = scmp.ne.s32.totalorder %s5221_s15, %s4863_s30  ;;  %s4868_s14 = scalar_lea.hbm %s5758_s0, 2048 }
  0x85   : > { %p4869_p7 = scmp.lt.u32.totalorder %s5221_s15, %s5758_s0  ;;  %p4870_p10 = scmp.lt.u32.totalorder %s4868_s14, %s4863_s30 }
  0x86   : > { %p4866_p3 = pnand %p4865_p0, %p4864_p8  ;;  %p4872_p9 = scmp.lt.u32.totalorder %s4863_s30, %s5221_s15 }
  0x87   : > { %p4871_p13 = por %p4870_p10, %p4869_p7 }
  0x88   : > { %p4867_p5 = pneg %p4866_p3 }
  0x89   : > { %p4873_p12 = por %p4872_p9, %p4871_p13 }
  0x8b   : > { %p4874_p2 = pnand %p4873_p12, %p4867_p5 }
  0x8d   : > { %4877 = shalt.err (!%p4874_p2)
}
  0x8e   : > { %s4878_s29 = scalar_lea.vmem %s5223_s3, 1024  ;;  %s4975_s12 = smov [#allocation3]  }
  0x8f   : > { %p4879_p4 = scmp.ne.s32.totalorder %s5223_s3, %s4878_s29  ;;  %s4883_s16 = sshll.u32 %s4975_s12, 4  ;;  %s4884_s16 = int_to_ptr.vmem [resolvable:$false] %s4883_s16 }
  0x90   : > { %s4885_s27 = scalar_lea.vmem %s4884_s16, 2048  ;;  %p4886_p3 = scmp.lt.s32.totalorder %s5223_s3, %s4884_s16 }
  0x91   : > { %p4881_p6 = pnand %p4879_p4, %p4865_p0  ;;  %p4887_p7 = scmp.lt.s32.totalorder %s4885_s27, %s4878_s29 }
  0x93   : > { %p4882_p8 = pneg %p4881_p6  ;;  %p4888_p10 = por %p4887_p7, %p4886_p3 }
  0x95   : > { %p4889_p13 = pnand %p4888_p10, %p4882_p8 }
  0x97   : > { %4892 = shalt.err (!%p4889_p13)
}
  0x98   : > { %4496 = dma.hbm_to_vmem [thread:$0]  (!%p5225_p11), %s5221_s15, 1024, %s5223_s3, %s5229_s28, %s4972_s17, %s4972_s17, %s4973_s11  }
  0x99   : > { %p5791_p0 = scmp.ne.s32.totalorder %s5783_s25, 0 }
  0x9a   : > { %s5263_s30 = sand.u32 (!%p5791_p0), 1, %s4959_s18   ;;  %p5792_p5 = scmp.ne.s32.totalorder (!%p5791_p0), %s5780_s23, 0 }
  0x9b   : > { %401 = sbr.rel (%p5791_p0) target bundleno = 2834 (0xb12), region = 64  ;;  %s3811_s14 = sshll.u32 (!%p5791_p0), %s5263_s30, 6 }
  0x9c   : > { %s404_s13 = scalar_lea.sflag (!%p5791_p0), [#allocation4], %s5263_s30  ;;  %s5267_s29 = scalar_lea.vmem (!%p5791_p0), [#allocation3], %s3811_s14 }
  0xa2   : > { %4938 = dma.done.wait (%p5792_p5), %s404_s13, 1024  }
  0xa3   : > { %4940 = vsyncadd (%p5792_p5), %s404_s13, 4294966272  ;;  %p5793_p11 = scmp.eq.s32.totalorder %s5068_s21, 0 }
  0xa5   : > { %4942 = dma.done.wait (%p5793_p11), [#allocation7], 640   ;;  %p5794_p9 = pmov %p5793_p11 }
  0xa7   : > { %4944 = vsyncadd (%p5794_p9), [#allocation7], 4294966656  ;;  %p5795_p12 = pmov %p5794_p9 }
  0xa8   : > { %p5796_p2 = pmov %p5794_p9 }
  0xa9   : > { %4946 = dma.done.wait (%p5795_p12), [#allocation10], 1024  }
  0xaa   : > { %4948 = vsyncadd (%p5796_p2), [#allocation10], 4294966272  ;;  %vm483_vm0 = vcmask 261120   ;;  %v472_v0 = vld [vmem:[#allocation8] sm:$0xff]  ;;  %v473_v1 = vld [vmem:[#allocation8 + $0x8] sm:$0xff]  ;;  %v4976_v20 = vmov 0.0|0.0  }
  0xab   : > { %v474_v2 = vld [vmem:[#allocation8 + $0x10] sm:$0xff]  ;;  %v4320_v3 = vpack.c.bf16 %v473_v1, %v472_v0  ;;  %v475_v4 = vld [vmem:[#allocation8 + $0x18] sm:$0xff]  ;;  %v613_v8 = vld [vmem:[#allocation9] sm:$0xff]  ;;  %vm4977_vm1 = vmmov 0   ;;  %v4978_v21 = vmov 0.0   ;;  %vm730_vm2 = vcmask 64512  }
  0xac   : > { %v464_v5 = vld [vmem:[%s5267_s29] sm:$0xff]  ;;  %v4324_v6 = vpack.c.bf16 %v475_v4, %v474_v2  ;;  %v614_v9 = vld [vmem:[#allocation9 + $0x8] sm:$0xff]  ;;  %v615_v11 = vld [vmem:[#allocation9 + $0x10] sm:$0xff]  ;;  %s4979_s17 = smov 120   ;;  %vm1038_vm4 = vcmask 130048   ;;  %s4980_s3 = smov 112  }
  0xad   : > { %4050 = vmatprep.mubr.msk.f32.mxu0 %vm483_vm0, %v464_v5  ;;  %4321 = vmatprep.subr.bf16.mxu0 %v4320_v3  ;;  %v468_v7 = vld [vmem:[%s5267_s29 + $0x20] sm:$0xff]  ;;  %v4328_v10 = vpack.c.bf16 %v614_v9, %v613_v8  ;;  %v465_v13 = vld [vmem:[%s5267_s29 + $0x8] sm:$0xff]  ;;  %v466_v15 = vld [vmem:[%s5267_s29 + $0x10] sm:$0xff]  ;;  %s4981_s1 = smov 104   ;;  %s4982_s28 = smov 8   ;;  %vm2079_vm5 = vcmask 130112  }
  0xae   : > { %4456 = vmatprep.subr.bf16.mxu1 %v4320_v3  ;;  %4323 = vmatpush3.bf16.msra.mxu0 %v4320_v3  ;;  %v616_v12 = vld [vmem:[#allocation9 + $0x18] sm:$0xff]  ;;  %v469_v14 = vld [vmem:[%s5267_s29 + $0x28] sm:$0xff]  ;;  %v470_v16 = vld [vmem:[%s5267_s29 + $0x30] sm:$0xff]  ;;  %s4983_s12 = smov 16   ;;  %vm2776_vm6 = vcmask 195712   ;;  %s4984_s16 = smov 24  }
  0xaf   : > { %4458 = vmatpush3.bf16.msra.mxu1 %v4320_v3  ;;  %4325 = vmatprep.subr.bf16.mxu0 %v4324_v6  ;;  %v4332_v17 = vpack.c.bf16 %v616_v12, %v615_v11  ;;  %v467_v18 = vld [vmem:[%s5267_s29 + $0x18] sm:$0xff]  ;;  %v3817_v22 = vld [vmem:[%s5762_s4] ss:$0 sm:$0xff]  ;;  %vm5316_vm3 = vmpackc.low %vm730_vm2, %vm730_vm2  ;;  %vm3473_vm7 = vcmask 261312   ;;  %s5799_s14 = sld [smem:[#allocation21_spill]] }
  0xb0   : > { %4457 = vmatprep.subr.bf16.mxu1 %v4324_v6  ;;  %4056 = vmatprep.mubr.msk.f32.mxu1 %vm483_vm0, %v468_v7  ;;  %v471_v19 = vld [vmem:[%s5267_s29 + $0x38] sm:$0xff]  ;;  %v5335_v49 = vld [vmem:[#allocation6] sm:$0xff]  ;;  %s3675_s29 = scalar_lea.sflag [#allocation5], %s5263_s30 }
  0xb1   : > { %v3826_v54 = vld [vmem:[%s5763_s5] ss:$0 sm:$0xff] }
  0xb2   : > { %4327 = vmatpush3.bf16.msra.mxu0 %v4324_v6 }
  0xb3   : > { %4459 = vmatpush3.bf16.msra.mxu1 %v4324_v6  ;;  %4336 = vmatprep.subr.bf16.mxu0 %v4976_v20 }
  0xb4   : > { %4329 = vmatprep.subr.bf16.mxu1 %v4328_v10 }
  0xb5   : > { %4051 = vmatmul.mubr.msk.f32.vlgmr.msra.gmra.mrb[0].mxu0 %vm483_vm0, %v465_v13 }
  0xb6   : > { %4057 = vmatmul.mubr.msk.f32.vlgmr.msra.gmra.mrb[0].mxu1 %vm483_vm0, %v469_v14  ;;  %4053 = vmatprep.mubr.msk.f32.mxu0 %vm483_vm0, %v466_v15 }
  0xb7   : > { %4059 = vmatprep.mubr.msk.f32.mxu1 %vm483_vm0, %v470_v16  ;;  %4331 = vmatpush3.bf16.msra.mxu1 %v4328_v10 }
  0xb8   : > { %4333 = vmatprep.subr.bf16.mxu1 %v4332_v17 }
  0xb9   : > { %4054 = vmatmul.mubr.msk.f32.gmra.mrb[2].mxu0 %vm483_vm0, %v467_v18 }
  0xba   : > { %4060 = vmatmul.mubr.msk.f32.gmra.mrb[2].mxu1 %vm483_vm0, %v471_v19  ;;  %4086 = vmatprep.mubr.msk.f32.mxu0 %vm4977_vm1, %v4978_v21 }
  0xbb   : > { %4070 = vmatprep.mubr.msk.f32.mxu1 %vm483_vm0, %v464_v5  ;;  %4335 = vmatpush3.bf16.msra.mxu1 %v4332_v17 }
  0xbc   : > { %4340 = vmatprep.subr.bf16.mxu1 %v4976_v20 }
  0xbe   : > { %4071 = vmatmul.mubr.msk.f32.vlgmr.msra.gmra.mrb[4].mxu1 %vm483_vm0, %v465_v13 }
  0xbf   : > { %4073 = vmatprep.mubr.msk.f32.mxu1 %vm483_vm0, %v466_v15 }
  0xc2   : > { %4074 = vmatmul.mubr.msk.f32.gmra.mrb[6].mxu1 %vm483_vm0, %v467_v18 }
  0xc3   : > { %4076 = vmatprep.mubr.msk.f32.mxu1 %vm483_vm0, %v468_v7 }
  0xc6   : > { %4077 = vmatmul.mubr.msk.f32.gmra.mrb[8].mxu1 %vm483_vm0, %v469_v14 }
  0xc7   : > { %4079 = vmatprep.mubr.msk.f32.mxu1 %vm483_vm0, %v470_v16 }
  0xca   : > { %4080 = vmatmul.mubr.msk.f32.gmra.mrb[10].mxu1 %vm483_vm0, %v471_v19 }
  0xcb   : > { %4093 = vmatprep.mubr.msk.f32.mxu1 %vm4977_vm1, %v4978_v21 }
 0x188   : > { %v4052_v23 = vpop.f32.mrb[0].mxu0 }
 0x189   : > { %v4058_v24 = vpop.f32.mrb[0].mxu1  ;;  %v580_v25 = vadd.f32 %v4052_v23, %v3817_v22  ;;  %v574_v26 = vpop.f32.mrb[1].mxu0 }
 0x18a   : > { %v600_v27 = vadd.f32 %v4058_v24, %v3817_v22  ;;  %v594_v28 = vpop.f32.mrb[1].mxu1  ;;  %v575_v29 = vadd.f32 %v3817_v22, %v574_v26 }
 0x18b   : > { %v595_v30 = vadd.f32 %v3817_v22, %v594_v28 }
 0x18c   : > { %v4337_v32 = vpack.c.bf16 %v580_v25, %v575_v29  ;;  %v4055_v33 = vpop.f32.mrb[2].mxu0  ;;  %v5320_v36 = vpack.i.bf16 %v580_v25, %v575_v29 }
 0x18d   : > { %v4345_v34 = vpack.c.bf16 %v600_v27, %v595_v30  ;;  %v4061_v35 = vpop.f32.mrb[2].mxu1  ;;  %v5322_v37 = vpack.i.bf16 %v600_v27, %v595_v30  ;;  %v590_v38 = vadd.f32 %v4055_v33, %v3817_v22  ;;  %v584_v39 = vpop.f32.mrb[3].mxu0 }
 0x18e   : > { %v610_v40 = vadd.f32 %v4061_v35, %v3817_v22  ;;  %v604_v41 = vpop.f32.mrb[3].mxu1  ;;  %v585_v42 = vadd.f32 %v3817_v22, %v584_v39  ;;  %4339 = vmatpush3.bf16.xpose.msk.msra.mxu0 %vm5316_vm3, %v4337_v32 }
 0x18f   : > { %v605_v43 = vadd.f32 %v3817_v22, %v604_v41  ;;  %4344 = vmatprep.subr.bf16.mxu0 %v4976_v20 }
 0x190   : > { %v4341_v44 = vpack.c.bf16 %v590_v38, %v585_v42  ;;  %v5327_v45 = vpack.i.bf16 %v590_v38, %v585_v42 }
 0x191   : > { %v4349_v46 = vpack.c.bf16 %v610_v40, %v605_v43  ;;  %v5329_v47 = vpack.i.bf16 %v610_v40, %v605_v43  ;;  %v4072_v48 = vpop.f32.mrb[4].mxu1 }
 0x192   : > { %4565 = vrot.lane.b32.xlu1 %v5327_v45, %s4979_s17  ;;  %4343 = vmatpush3.bf16.xpose.msk.msra.mxu1 %vm5316_vm3, %v4341_v44  ;;  %v690_v50 = vpop.f32.mrb[5].mxu1  ;;  %v696_v55 = vadd.f32 %v4072_v48, %v3826_v54 }
 0x193   : > { %4348 = vmatprep.subr.bf16.mxu1 %v4976_v20  ;;  %v691_v56 = vadd.f32 %v3826_v54, %v690_v50 }
 0x195   : > { %4087 = vmatmul.mubr.msk.f32.vlgmr.msra.gmra.mrb[4].mxu0 %vm730_vm2, %v5335_v49  ;;  %v4075_v51 = vpop.f32.mrb[6].mxu1  ;;  %v4353_v59 = vpack.c.bf16 %v696_v55, %v691_v56  ;;  %v5365_v60 = vpack.i.bf16 %v696_v55, %v691_v56 }
 0x196   : > { %4347 = vmatpush3.bf16.xpose.msk.msra.mxu0 %vm5316_vm3, %v4345_v34  ;;  %4100 = vmatprep.mubr.msk.f32.mxu0 %vm4977_vm1, %v4978_v21  ;;  %v700_v52 = vpop.f32.mrb[7].mxu1  ;;  %v706_v57 = vadd.f32 %v4075_v51, %v3826_v54 }
 0x197   : > { %1379 = vrot.lane.b32.xlu1 %v5335_v49, %s4979_s17  ;;  %4352 = vmatprep.subr.bf16.mxu0 %v4976_v20  ;;  %v701_v58 = vadd.f32 %v3826_v54, %v700_v52 }
 0x199   : > { %4094 = vmatmul.mubr.msk.f32.vlgmr.msra.gmra.mrb[12].mxu1 %vm730_vm2, %v5335_v49  ;;  %v4078_v53 = vpop.f32.mrb[8].mxu1  ;;  %v4356_v62 = vpack.c.bf16 %v706_v57, %v701_v58  ;;  %v5368_v63 = vpack.i.bf16 %v706_v57, %v701_v58 }
 0x19a   : > { %4351 = vmatpush3.bf16.xpose.msk.msra.mxu1 %vm5316_vm3, %v4349_v46  ;;  %4107 = vmatprep.mubr.msk.f32.mxu1 %vm4977_vm1, %v4978_v21  ;;  %v716_v61 = vadd.f32 %v4078_v53, %v3826_v54  ;;  %v710_v0 = vpop.f32.mrb[9].mxu1 }
 0x19b   : > { %4355 = vmatprep.subr.bf16.mxu1 %v4976_v20  ;;  %v711_v1 = vadd.f32 %v3826_v54, %v710_v0 }
 0x19d   : > { %4101 = vmatmul.mubr.msk.f32.vlgmr.msra.gmra.mrb[6].mxu0 %vm730_vm2, %v5335_v49  ;;  %v4081_v2 = vpop.f32.mrb[10].mxu1  ;;  %v5371_v3 = vpack.i.bf16 %v716_v61, %v711_v1  ;;  %v4359_v4 = vpack.c.bf16 %v716_v61, %v711_v1 }
 0x19e   : > { %4114 = vmatprep.mubr.msk.f32.mxu0 %vm4977_vm1, %v4978_v21  ;;  %4354 = vmatpush3.bf16.msra.mxu0 %v4353_v59  ;;  %v726_v5 = vadd.f32 %v4081_v2, %v3826_v54  ;;  %v720_v6 = vpop.f32.mrb[11].mxu1 }
 0x19f   : > { %4358 = vmatprep.subr.bf16.mxu0 %v4976_v20  ;;  %v721_v7 = vadd.f32 %v3826_v54, %v720_v6 }
 0x1a1   : > { %4108 = vmatmul.mubr.msk.f32.vlgmr.msra.gmra.mrb[14].mxu1 %vm730_vm2, %v5335_v49  ;;  %v5373_v8 = vpack.i.bf16 %v726_v5, %v721_v7  ;;  %v4362_v9 = vpack.c.bf16 %v726_v5, %v721_v7 }
 0x1a2   : > { %4121 = vmatprep.mubr.msk.f32.mxu1 %vm4977_vm1, %v4978_v21  ;;  %4357 = vmatpush3.bf16.msra.mxu1 %v4356_v62 }
 0x1a3   : > { %4361 = vmatprep.subr.bf16.mxu1 %v4976_v20 }
 0x204   : > { %v4566_v24 = vpop.permute.xlu1 %4565 }
 0x205   : > { %v4568_v50 = vunpack.i.h.bf16 %v4566_v24  ;;  %v4567_v51 = vunpack.i.l.bf16 %v4566_v24 }
 0x207   : > { %v4369_v55 = vpack.c.bf16 %v4568_v50, %v4567_v51 }
 0x209   : > { %v5393_v28 = vpop.permute.xlu1 %1379 }
 0x268   : > { %v806_v10 = vpop.f32.mrb[4].mxu0 }
 0x269   : > { %v1039_v11 = vsel %vm1038_vm4, %v806_v10, -inf  ;;  %v4088_v12 = vpop.f32.mrb[5].mxu0 }
 0x26a   : > { %1040 = vmax.xlane.f32.xlu0 %v1039_v11 }
 0x26c   : > { %v882_v13 = vpop.f32.mrb[12].mxu1 }
 0x26d   : > { %v1042_v14 = vsel %vm1038_vm4, %v882_v13, -inf  ;;  %v4095_v15 = vpop.f32.mrb[13].mxu1 }
 0x26e   : > { %1043 = vmax.xlane.f32.xlu0 %v1042_v14 }
 0x270   : > { %v958_v16 = vpop.f32.mrb[6].mxu0 }
 0x271   : > { %v1045_v17 = vsel %vm1038_vm4, %v958_v16, -inf  ;;  %v4102_v18 = vpop.f32.mrb[7].mxu0 }
 0x272   : > { %1046 = vmax.xlane.f32.xlu1 %v1045_v17 }
 0x274   : > { %v1034_v19 = vpop.f32.mrb[14].mxu1 }
 0x275   : > { %v1048_v22 = vsel %vm1038_vm4, %v1034_v19, -inf  ;;  %v4109_v23 = vpop.f32.mrb[15].mxu1 }
 0x276   : > { %1049 = vmax.xlane.f32.xlu1 %v1048_v22 }
 0x284   : > { %4560 = vrot.lane.b32.xlu0 %v5320_v36, %s4979_s17 }
 0x287   : > { %4570 = vrot.lane.b32.xlu1 %v5322_v37, %s4979_s17 }
 0x288   : > { %4575 = vrot.lane.b32.xlu0 %v5329_v47, %s4979_s17 }
 0x28b   : > { %4580 = vrot.lane.b32.xlu1 %v5365_v60, %s4979_s17 }
 0x28c   : > { %4585 = vrot.lane.b32.xlu0 %v5368_v63, %s4979_s17 }
 0x28f   : > { %4590 = vrot.lane.b32.xlu1 %v5371_v3, %s4979_s17 }
 0x293   : > { %4595 = vrot.lane.b32.xlu1 %v5373_v8, %s4979_s17  ;;  %s3816_s17 = sshll.u32 %s5263_s30, 5 }
 0x2f7   : > { %v1041_v25 = vpop.xlane.xlu0 %1040 }
 0x2f8   : > { %v1051_v26 = vsub.f32 %v806_v10, %v1041_v25 }
 0x2fa   : > { %v1055_v27 = vmul.f32 1.442695, %v1051_v26 }
 0x2fb   : > { %v1044_v29 = vpop.xlane.xlu0 %1043 }
 0x2fc   : > { %4679 = vpow2.f32 %v1055_v27  ;;  %v1052_v30 = vsub.f32 %v882_v13, %v1044_v29 }
 0x2fe   : > { %v1057_v32 = vmul.f32 1.442695, %v1052_v30 }
 0x2ff   : > { %v1047_v33 = vpop.xlane.xlu1 %1046  ;;  %v4561_v42 = vpop.permute.xlu0 %4560 }
 0x300   : > { %4681 = vpow2.f32 %v1057_v32  ;;  %v1053_v34 = vsub.f32 %v958_v16, %v1047_v33  ;;  %v4563_v44 = vunpack.i.h.bf16 %v4561_v42  ;;  %v4562_v46 = vunpack.i.l.bf16 %v4561_v42 }
 0x302   : > { %v1059_v35 = vmul.f32 1.442695, %v1053_v34  ;;  %v4365_v52 = vpack.c.bf16 %v4563_v44, %v4562_v46 }
 0x303   : > { %v1050_v38 = vpop.xlane.xlu1 %1049  ;;  %v4576_v58 = vpop.permute.xlu0 %4575 }
 0x304   : > { %4683 = vpow2.f32 %v1059_v35  ;;  %v1054_v39 = vsub.f32 %v1034_v19, %v1050_v38  ;;  %v4578_v59 = vunpack.i.h.bf16 %v4576_v58  ;;  %v4577_v61 = vunpack.i.l.bf16 %v4576_v58 }
 0x306   : > { %v5395_v40 = vpop.eup %4679  ;;  %v1061_v41 = vmul.f32 1.442695, %v1054_v39  ;;  %v4377_v1 = vpack.c.bf16 %v4578_v59, %v4577_v61 }
 0x307   : > { %4115 = vmatmul.mubr.msk.f32.vlgmr.msra.gmra.mrb[8].mxu0 %vm1038_vm4, %v5395_v40  ;;  %v4571_v53 = vpop.permute.xlu1 %4570  ;;  %v4586_v5 = vpop.permute.xlu0 %4585 }
 0x308   : > { %4685 = vpow2.f32 %v1061_v41  ;;  %4360 = vmatpush3.bf16.msra.mxu0 %v4359_v4  ;;  %4128 = vmatprep.mubr.msk.f32.mxu0 %vm4977_vm1, %v4978_v21  ;;  %v4573_v56 = vunpack.i.h.bf16 %v4571_v53  ;;  %v4572_v57 = vunpack.i.l.bf16 %v4571_v53  ;;  %v4588_v6 = vunpack.i.h.bf16 %v4586_v5 }
 0x309   : > { %4364 = vmatprep.subr.bf16.mxu0 %v4976_v20  ;;  %v4587_v7 = vunpack.i.l.bf16 %v4586_v5 }
 0x30a   : > { %v5402_v43 = vpop.eup %4681  ;;  %v4373_v62 = vpack.c.bf16 %v4573_v56, %v4572_v57 }
 0x30b   : > { %4122 = vmatmul.mubr.msk.f32.vlgmr.msra.gmra.mrb[16].mxu1 %vm1038_vm4, %v5402_v43  ;;  %v4581_v0 = vpop.permute.xlu1 %4580  ;;  %v4384_v10 = vpack.c.bf16 %v4588_v6, %v4587_v7 }
 0x30c   : > { %4363 = vmatpush3.bf16.msra.mxu1 %v4362_v9  ;;  %4135 = vmatprep.mubr.msk.f32.mxu1 %vm4977_vm1, %v4978_v21  ;;  %v4583_v2 = vunpack.i.h.bf16 %v4581_v0  ;;  %v4582_v4 = vunpack.i.l.bf16 %v4581_v0 }
 0x30d   : > { %4368 = vmatprep.subr.bf16.mxu1 %v4976_v20 }
 0x30e   : > { %v5409_v48 = vpop.eup %4683  ;;  %v4381_v9 = vpack.c.bf16 %v4583_v2, %v4582_v4 }
 0x30f   : > { %4129 = vmatmul.mubr.msk.f32.vlgmr.msra.gmra.mrb[10].mxu0 %vm1038_vm4, %v5409_v48  ;;  %v4591_v34 = vpop.permute.xlu1 %4590 }
 0x310   : > { %4142 = vmatprep.mubr.msk.f32.mxu0 %vm4977_vm1, %v4978_v21  ;;  %v4592_v53 = vunpack.i.l.bf16 %v4591_v34 }
 0x311   : > { %4367 = vmatpush3.bf16.xpose.msk.msra.mxu0 %vm5316_vm3, %v4365_v52  ;;  %v4593_v52 = vunpack.i.h.bf16 %v4591_v34 }
 0x312   : > { %v5417_v54 = vpop.eup %4685  ;;  %4372 = vmatprep.subr.bf16.mxu0 %v4976_v20 }
 0x313   : > { %4136 = vmatmul.mubr.msk.f32.vlgmr.msra.gmra.mrb[18].mxu1 %vm1038_vm4, %v5417_v54  ;;  %v4596_v35 = vpop.permute.xlu1 %4595  ;;  %v4387_v59 = vpack.c.bf16 %v4593_v52, %v4592_v53 }
 0x314   : > { %4149 = vmatprep.mubr.msk.f32.mxu1 %vm4977_vm1, %v4978_v21  ;;  %v4598_v61 = vunpack.i.h.bf16 %v4596_v35 }
 0x315   : > { %4371 = vmatpush3.bf16.xpose.msk.msra.mxu1 %vm5316_vm3, %v4369_v55 }
 0x316   : > { %4376 = vmatprep.subr.bf16.mxu1 %v4976_v20 }
 0x318   : > { %4143 = vmatmul.mubr.msk.f32.vlgmr.msra.gmra.mrb[12].mxu0 %vm730_vm2, %v5393_v28 }
 0x319   : > { %4375 = vmatpush3.bf16.xpose.msk.msra.mxu0 %vm5316_vm3, %v4373_v62  ;;  %4156 = vmatprep.mubr.msk.f32.mxu0 %vm4977_vm1, %v4978_v21  ;;  %v4597_v62 = vunpack.i.l.bf16 %v4596_v35 }
 0x31a   : > { %4380 = vmatprep.subr.bf16.mxu0 %v4976_v20 }
 0x31b   : > { %v4390_v4 = vpack.c.bf16 %v4598_v61, %v4597_v62 }
 0x31c   : > { %4150 = vmatmul.mubr.msk.f32.vlgmr.msra.gmra.mrb[20].mxu1 %vm730_vm2, %v5393_v28 }
 0x31d   : > { %4379 = vmatpush3.bf16.xpose.msk.msra.mxu1 %vm5316_vm3, %v4377_v1  ;;  %4163 = vmatprep.mubr.msk.f32.mxu1 %vm4977_vm1, %v4978_v21 }
 0x31e   : > { %4383 = vmatprep.subr.bf16.mxu1 %v4976_v20 }
 0x320   : > { %4157 = vmatmul.mubr.msk.f32.vlgmr.msra.gmra.mrb[14].mxu0 %vm730_vm2, %v5393_v28 }
 0x321   : > { %4382 = vmatpush3.bf16.msra.mxu0 %v4381_v9  ;;  %4170 = vmatprep.mubr.msk.f32.mxu0 %vm4977_vm1, %v4978_v21 }
 0x322   : > { %4386 = vmatprep.subr.bf16.mxu0 %v4976_v20 }
 0x324   : > { %4164 = vmatmul.mubr.msk.f32.vlgmr.msra.gmra.mrb[22].mxu1 %vm730_vm2, %v5393_v28 }
 0x325   : > { %4385 = vmatpush3.bf16.msra.mxu1 %v4384_v10  ;;  %4177 = vmatprep.mubr.msk.f32.mxu1 %vm4977_vm1, %v4978_v21 }
 0x326   : > { %4389 = vmatprep.subr.bf16.mxu1 %v4976_v20 }
 0x3da   : > { %v5451_v11 = vpop.f32.mrb[8].mxu0 }
 0x3db   : > { %v4116_v12 = vpop.f32.mrb[9].mxu0 }
 0x3de   : > { %v5453_v13 = vpop.f32.mrb[16].mxu1 }
 0x3df   : > { %v4123_v14 = vpop.f32.mrb[17].mxu1 }
 0x3e2   : > { %v5455_v15 = vpop.f32.mrb[10].mxu0 }
 0x3e3   : > { %v4130_v16 = vpop.f32.mrb[11].mxu0 }
 0x3e6   : > { %v5457_v17 = vpop.f32.mrb[18].mxu1 }
 0x3e7   : > { %v4137_v18 = vpop.f32.mrb[19].mxu1 }
 0x3eb   : > { %v1457_v19 = vpop.f32.mrb[12].mxu0 }
 0x3ec   : > { %v4144_v22 = vpop.f32.mrb[13].mxu0  ;;  %v1695_v23 = vsel %vm1038_vm4, %v1457_v19, -inf }
 0x3ed   : > { %1696 = vmax.xlane.f32.xlu1 %v1695_v23 }
 0x3ef   : > { %v1535_v24 = vpop.f32.mrb[20].mxu1 }
 0x3f0   : > { %v4151_v25 = vpop.f32.mrb[21].mxu1  ;;  %v1698_v26 = vsel %vm1038_vm4, %v1535_v24, -inf }
 0x3f1   : > { %1699 = vmax.xlane.f32.xlu0 %v1698_v26 }
 0x3f3   : > { %v1613_v27 = vpop.f32.mrb[14].mxu0 }
 0x3f4   : > { %v4158_v28 = vpop.f32.mrb[15].mxu0  ;;  %v1701_v29 = vsel %vm1038_vm4, %v1613_v27, -inf }
 0x3f5   : > { %1702 = vmax.xlane.f32.xlu0 %v1701_v29 }
 0x3f7   : > { %v1691_v30 = vpop.f32.mrb[22].mxu1 }
 0x3f8   : > { %v4165_v32 = vpop.f32.mrb[23].mxu1  ;;  %v1704_v33 = vsel %vm1038_vm4, %v1691_v30, -inf }
 0x3f9   : > { %1705 = vmax.xlane.f32.xlu0 %v1704_v33 }
 0x3fe   : > { %4600 = vrot.lane.b32.xlu1 %v5320_v36, %s4980_s3 }
 0x402   : > { %2084 = vrot.lane.b32.xlu1 %v5335_v49, %s4980_s3 }
 0x406   : > { %4615 = vrot.lane.b32.xlu1 %v5329_v47, %s4980_s3 }
 0x40a   : > { %4625 = vrot.lane.b32.xlu1 %v5368_v63, %s4980_s3 }
 0x40e   : > { %4630 = vrot.lane.b32.xlu1 %v5371_v3, %s4980_s3 }
 0x40f   : > { %4605 = vrot.lane.b32.xlu0 %v5327_v45, %s4980_s3 }
 0x412   : > { %4635 = vrot.lane.b32.xlu1 %v5373_v8, %s4980_s3 }
 0x413   : > { %4610 = vrot.lane.b32.xlu0 %v5322_v37, %s4980_s3 }
 0x417   : > { %4620 = vrot.lane.b32.xlu0 %v5365_v60, %s4980_s3  ;;  %s461_s3 = scalar_lea.vmem [#allocation12], %s3816_s17 }
 0x47a   : > { %v1697_v38 = vpop.xlane.xlu1 %1696 }
 0x47b   : > { %v1707_v39 = vsub.f32 %v1457_v19, %v1697_v38 }
 0x47d   : > { %v1711_v41 = vmul.f32 1.442695, %v1707_v39 }
 0x47e   : > { %v1700_v42 = vpop.xlane.xlu0 %1699  ;;  %v4601_v1 = vpop.permute.xlu1 %4600 }
 0x47f   : > { %4687 = vpow2.f32 %v1711_v41  ;;  %v1708_v44 = vsub.f32 %v1535_v24, %v1700_v42  ;;  %v4603_v6 = vunpack.i.h.bf16 %v4601_v1  ;;  %v4602_v7 = vunpack.i.l.bf16 %v4601_v1 }
 0x481   : > { %v1713_v46 = vmul.f32 1.442695, %v1708_v44  ;;  %v4393_v12 = vpack.c.bf16 %v4603_v6, %v4602_v7 }
 0x482   : > { %v1703_v50 = vpop.xlane.xlu0 %1702  ;;  %v2085_v10 = vpop.permute.xlu1 %2084 }
 0x483   : > { %4689 = vpow2.f32 %v1713_v46  ;;  %v1709_v51 = vsub.f32 %v1613_v27, %v1703_v50 }
 0x485   : > { %v1715_v55 = vmul.f32 1.442695, %v1709_v51 }
 0x486   : > { %v1706_v56 = vpop.xlane.xlu0 %1705  ;;  %v4616_v25 = vpop.permute.xlu1 %4615 }
 0x487   : > { %4691 = vpow2.f32 %v1715_v55  ;;  %v1710_v57 = vsub.f32 %v1691_v30, %v1706_v56  ;;  %v4618_v26 = vunpack.i.h.bf16 %v4616_v25  ;;  %v4617_v27 = vunpack.i.l.bf16 %v4616_v25 }
 0x489   : > { %v5472_v58 = vpop.eup %4687  ;;  %v1717_v0 = vmul.f32 1.442695, %v1710_v57  ;;  %v4405_v30 = vpack.c.bf16 %v4618_v26, %v4617_v27 }
 0x48a   : > { %4171 = vmatmul.mubr.msk.f32.vlgmr.msra.gmra.mrb[16].mxu0 %vm1038_vm4, %v5472_v58  ;;  %v4606_v5 = vpop.permute.xlu0 %4605  ;;  %v4626_v34 = vpop.permute.xlu1 %4625 }
 0x48b   : > { %4693 = vpow2.f32 %v1717_v0  ;;  %4388 = vmatpush3.bf16.msra.mxu0 %v4387_v59  ;;  %4184 = vmatprep.mubr.msk.f32.mxu0 %vm4977_vm1, %v4978_v21  ;;  %v4608_v14 = vunpack.i.h.bf16 %v4606_v5  ;;  %v4607_v16 = vunpack.i.l.bf16 %v4606_v5  ;;  %v4628_v35 = vunpack.i.h.bf16 %v4626_v34 }
 0x48c   : > { %4392 = vmatprep.subr.bf16.mxu0 %v4976_v20  ;;  %v4627_v38 = vunpack.i.l.bf16 %v4626_v34 }
 0x48d   : > { %v5479_v2 = vpop.eup %4689  ;;  %v4397_v22 = vpack.c.bf16 %v4608_v14, %v4607_v16 }
 0x48e   : > { %4178 = vmatmul.mubr.msk.f32.vlgmr.msra.gmra.mrb[24].mxu1 %vm1038_vm4, %v5479_v2  ;;  %v4611_v18 = vpop.permute.xlu0 %4610  ;;  %v4412_v41 = vpack.c.bf16 %v4628_v35, %v4627_v38 }
 0x48f   : > { %4391 = vmatpush3.bf16.msra.mxu1 %v4390_v4  ;;  %4191 = vmatprep.mubr.msk.f32.mxu1 %vm4977_vm1, %v4978_v21  ;;  %v4613_v23 = vunpack.i.h.bf16 %v4611_v18  ;;  %v4612_v24 = vunpack.i.l.bf16 %v4611_v18 }
 0x490   : > { %4396 = vmatprep.subr.bf16.mxu1 %v4976_v20 }
 0x491   : > { %v5486_v9 = vpop.eup %4691  ;;  %v4401_v28 = vpack.c.bf16 %v4613_v23, %v4612_v24 }
 0x492   : > { %4185 = vmatmul.mubr.msk.f32.vlgmr.msra.gmra.mrb[18].mxu0 %vm1038_vm4, %v5486_v9  ;;  %v4621_v29 = vpop.permute.xlu0 %4620 }
 0x493   : > { %4198 = vmatprep.mubr.msk.f32.mxu0 %vm4977_vm1, %v4978_v21  ;;  %v4623_v32 = vunpack.i.h.bf16 %v4621_v29  ;;  %v4622_v33 = vunpack.i.l.bf16 %v4621_v29 }
 0x494   : > { %4395 = vmatpush3.bf16.xpose.msk.msra.mxu0 %vm5316_vm3, %v4393_v12  ;;  %v4631_v12 = vpop.permute.xlu1 %4630 }
 0x495   : > { %v5494_v19 = vpop.eup %4693  ;;  %4400 = vmatprep.subr.bf16.mxu0 %v4976_v20  ;;  %v4409_v39 = vpack.c.bf16 %v4623_v32, %v4622_v33  ;;  %v4633_v25 = vunpack.i.h.bf16 %v4631_v12 }
 0x496   : > { %4192 = vmatmul.mubr.msk.f32.vlgmr.msra.gmra.mrb[26].mxu1 %vm1038_vm4, %v5494_v19 }
 0x497   : > { %4205 = vmatprep.mubr.msk.f32.mxu1 %vm4977_vm1, %v4978_v21 }
 0x498   : > { %4399 = vmatpush3.bf16.xpose.msk.msra.mxu1 %vm5316_vm3, %v4397_v22  ;;  %v4636_v14 = vpop.permute.xlu1 %4635 }
 0x499   : > { %4404 = vmatprep.subr.bf16.mxu1 %v4976_v20  ;;  %v4638_v29 = vunpack.i.h.bf16 %v4636_v14 }
 0x49b   : > { %4199 = vmatmul.mubr.msk.f32.vlgmr.msra.gmra.mrb[20].mxu0 %vm730_vm2, %v2085_v10 }
 0x49c   : > { %4403 = vmatpush3.bf16.xpose.msk.msra.mxu0 %vm5316_vm3, %v4401_v28  ;;  %4212 = vmatprep.mubr.msk.f32.mxu0 %vm4977_vm1, %v4978_v21 }
 0x49d   : > { %4408 = vmatprep.subr.bf16.mxu0 %v4976_v20 }
 0x49f   : > { %4206 = vmatmul.mubr.msk.f32.vlgmr.msra.gmra.mrb[28].mxu1 %vm730_vm2, %v2085_v10 }
 0x4a0   : > { %4407 = vmatpush3.bf16.xpose.msk.msra.mxu1 %vm5316_vm3, %v4405_v30  ;;  %4219 = vmatprep.mubr.msk.f32.mxu1 %vm4977_vm1, %v4978_v21  ;;  %v4637_v30 = vunpack.i.l.bf16 %v4636_v14 }
 0x4a1   : > { %4411 = vmatprep.subr.bf16.mxu1 %v4976_v20 }
 0x4a2   : > { %v4418_v35 = vpack.c.bf16 %v4638_v29, %v4637_v30 }
 0x4a3   : > { %4213 = vmatmul.mubr.msk.f32.vlgmr.msra.gmra.mrb[22].mxu0 %vm730_vm2, %v2085_v10 }
 0x4a4   : > { %4410 = vmatpush3.bf16.msra.mxu0 %v4409_v39  ;;  %4226 = vmatprep.mubr.msk.f32.mxu0 %vm4977_vm1, %v4978_v21 }
 0x4a5   : > { %4414 = vmatprep.subr.bf16.mxu0 %v4976_v20 }
 0x4a7   : > { %4220 = vmatmul.mubr.msk.f32.vlgmr.msra.gmra.mrb[30].mxu1 %vm730_vm2, %v2085_v10 }
 0x4a8   : > { %4413 = vmatpush3.bf16.msra.mxu1 %v4412_v41  ;;  %4233 = vmatprep.mubr.msk.f32.mxu1 %vm4977_vm1, %v4978_v21 }
 0x4a9   : > { %4417 = vmatprep.subr.bf16.mxu1 %v4976_v20 }
 0x55d   : > { %v5524_v42 = vpop.f32.mrb[16].mxu0 }
 0x55e   : > { %v4172_v44 = vpop.f32.mrb[17].mxu0 }
 0x561   : > { %v5526_v46 = vpop.f32.mrb[24].mxu1 }
 0x562   : > { %v4179_v50 = vpop.f32.mrb[25].mxu1 }
 0x565   : > { %v5528_v51 = vpop.f32.mrb[18].mxu0 }
 0x566   : > { %v4186_v52 = vpop.f32.mrb[19].mxu0 }
 0x569   : > { %v5530_v53 = vpop.f32.mrb[26].mxu1 }
 0x56a   : > { %v4193_v55 = vpop.f32.mrb[27].mxu1 }
 0x56e   : > { %v2162_v56 = vpop.f32.mrb[20].mxu0 }
 0x56f   : > { %v2400_v57 = vsel %vm1038_vm4, %v2162_v56, -inf  ;;  %v4200_v59 = vpop.f32.mrb[21].mxu0 }
 0x570   : > { %2401 = vmax.xlane.f32.xlu0 %v2400_v57 }
 0x572   : > { %v2240_v61 = vpop.f32.mrb[28].mxu1 }
 0x573   : > { %v2403_v62 = vsel %vm1038_vm4, %v2240_v61, -inf  ;;  %v4207_v0 = vpop.f32.mrb[29].mxu1 }
 0x574   : > { %2404 = vmax.xlane.f32.xlu1 %v2403_v62 }
 0x576   : > { %v2318_v1 = vpop.f32.mrb[22].mxu0 }
 0x577   : > { %v4214_v4 = vpop.f32.mrb[23].mxu0  ;;  %v2406_v5 = vsel %vm1038_vm4, %v2318_v1, -inf }
 0x578   : > { %2407 = vmax.xlane.f32.xlu0 %v2406_v5 }
 0x57a   : > { %v2396_v6 = vpop.f32.mrb[30].mxu1 }
 0x57b   : > { %v4221_v7 = vpop.f32.mrb[31].mxu1  ;;  %v2409_v10 = vsel %vm1038_vm4, %v2396_v6, -inf }
 0x57c   : > { %2410 = vmax.xlane.f32.xlu0 %v2409_v10 }
 0x585   : > { %4645 = vrot.lane.b32.xlu1 %v5327_v45, %s4981_s1 }
 0x589   : > { %4655 = vrot.lane.b32.xlu1 %v5329_v47, %s4981_s1 }
 0x58d   : > { %4660 = vrot.lane.b32.xlu1 %v5365_v60, %s4981_s1 }
 0x592   : > { %4640 = vrot.lane.b32.xlu0 %v5320_v36, %s4981_s1  ;;  %v4632_v36 = vunpack.i.l.bf16 %v4631_v12 }
 0x596   : > { %4650 = vrot.lane.b32.xlu0 %v5322_v37, %s4981_s1 }
 0x59a   : > { %2781 = vrot.lane.b32.xlu0 %v5335_v49, %s4981_s1  ;;  %v4415_v49 = vpack.c.bf16 %v4633_v25, %v4632_v36 }
 0x5fd   : > { %v2402_v16 = vpop.xlane.xlu0 %2401 }
 0x5fe   : > { %v2412_v18 = vsub.f32 %v2162_v56, %v2402_v16 }
 0x600   : > { %v2416_v45 = vmul.f32 1.442695, %v2412_v18 }
 0x601   : > { %v2405_v22 = vpop.xlane.xlu1 %2404 }
 0x602   : > { %4695 = vpow2.f32 %v2416_v45  ;;  %v2413_v47 = vsub.f32 %v2240_v61, %v2405_v22 }
 0x604   : > { %v2418_v23 = vmul.f32 1.442695, %v2413_v47 }
 0x605   : > { %v2408_v24 = vpop.xlane.xlu0 %2407  ;;  %v4646_v41 = vpop.permute.xlu1 %4645 }
 0x606   : > { %4697 = vpow2.f32 %v2418_v23  ;;  %v2414_v60 = vsub.f32 %v2318_v1, %v2408_v24  ;;  %v4648_v50 = vunpack.i.h.bf16 %v4646_v41  ;;  %v4647_v52 = vunpack.i.l.bf16 %v4646_v41 }
 0x607   : > { %v1725_v41 = vsel %vm1038_vm4, %v5486_v9, 0.0 }
 0x608   : > { %v2420_v26 = vmul.f32 1.442695, %v2414_v60  ;;  %v4425_v61 = vpack.c.bf16 %v4648_v50, %v4647_v52 }
 0x609   : > { %v2411_v27 = vpop.xlane.xlu0 %2410  ;;  %v4656_v59 = vpop.permute.xlu1 %4655 }
 0x60a   : > { %4699 = vpow2.f32 %v2420_v26  ;;  %v2415_v37 = vsub.f32 %v2396_v6, %v2411_v27  ;;  %v4658_v4 = vunpack.i.h.bf16 %v4656_v59  ;;  %v4657_v5 = vunpack.i.l.bf16 %v4656_v59 }
 0x60c   : > { %v5548_v28 = vpop.eup %4695  ;;  %v2422_v32 = vmul.f32 1.442695, %v2415_v37  ;;  %v4433_v10 = vpack.c.bf16 %v4658_v4, %v4657_v5 }
 0x60d   : > { %4227 = vmatmul.mubr.msk.f32.vlgmr.msra.gmra.mrb[24].mxu0 %vm1038_vm4, %v5548_v28  ;;  %v4641_v33 = vpop.permute.xlu0 %4640  ;;  %v4661_v7 = vpop.permute.xlu1 %4660 }
 0x60e   : > { %4701 = vpow2.f32 %v2422_v32  ;;  %4416 = vmatpush3.bf16.msra.mxu0 %v4415_v49  ;;  %4240 = vmatprep.mubr.msk.f32.mxu0 %vm4977_vm1, %v4978_v21  ;;  %v4643_v38 = vunpack.i.h.bf16 %v4641_v33  ;;  %v4642_v39 = vunpack.i.l.bf16 %v4641_v33  ;;  %v4663_v12 = vunpack.i.h.bf16 %v4661_v7 }
 0x60f   : > { %4420 = vmatprep.subr.bf16.mxu0 %v4976_v20  ;;  %v4662_v14 = vunpack.i.l.bf16 %v4661_v7 }
 0x610   : > { %v5555_v34 = vpop.eup %4697  ;;  %v4421_v55 = vpack.c.bf16 %v4643_v38, %v4642_v39  ;;  %v1719_v39 = vsel %vm1038_vm4, %v5472_v58, 0.0  ;;  %v1728_v58 = vsel %vm1038_vm4, %v5494_v19, 0.0 }
 0x611   : > { %4234 = vmatmul.mubr.msk.f32.vlgmr.msra.gmra.mrb[32].mxu1 %vm1038_vm4, %v5555_v34  ;;  %v4651_v56 = vpop.permute.xlu0 %4650  ;;  %v4437_v16 = vpack.c.bf16 %v4663_v12, %v4662_v14 }
 0x612   : > { %4419 = vmatpush3.bf16.msra.mxu1 %v4418_v35  ;;  %4247 = vmatprep.mubr.msk.f32.mxu1 %vm4977_vm1, %v4978_v21  ;;  %v4653_v62 = vunpack.i.h.bf16 %v4651_v56  ;;  %v4652_v0 = vunpack.i.l.bf16 %v4651_v56 }
 0x613   : > { %4424 = vmatprep.subr.bf16.mxu1 %v4976_v20 }
 0x614   : > { %v5562_v44 = vpop.eup %4699  ;;  %v4429_v6 = vpack.c.bf16 %v4653_v62, %v4652_v0 }
 0x615   : > { %4241 = vmatmul.mubr.msk.f32.vlgmr.msra.gmra.mrb[26].mxu0 %vm1038_vm4, %v5562_v44  ;;  %v2782_v1 = vpop.permute.xlu0 %2781  ;;  %v2430_v50 = vsel %vm1038_vm4, %v5562_v44, 0.0 }
 0x616   : > { %4254 = vmatprep.mubr.msk.f32.mxu0 %vm4977_vm1, %v4978_v21 }
 0x617   : > { %4423 = vmatpush3.bf16.xpose.msk.msra.mxu0 %vm5316_vm3, %v4421_v55 }
 0x618   : > { %v5570_v57 = vpop.eup %4701  ;;  %4428 = vmatprep.subr.bf16.mxu0 %v4976_v20 }
 0x619   : > { %4248 = vmatmul.mubr.msk.f32.vlgmr.msra.gmra.mrb[34].mxu1 %vm1038_vm4, %v5570_v57  ;;  %v2433_v9 = vsel %vm1038_vm4, %v5570_v57, 0.0 }
 0x61a   : > { %4261 = vmatprep.mubr.msk.f32.mxu1 %vm4977_vm1, %v4978_v21 }
 0x61b   : > { %4427 = vmatpush3.bf16.xpose.msk.msra.mxu1 %vm5316_vm3, %v4425_v61 }
 0x61c   : > { %4432 = vmatprep.subr.bf16.mxu1 %v4976_v20 }
 0x61e   : > { %4255 = vmatmul.mubr.msk.f32.vlgmr.msra.gmra.mrb[28].mxu0 %vm730_vm2, %v2782_v1 }
 0x61f   : > { %4431 = vmatpush3.bf16.xpose.msk.msra.mxu0 %vm5316_vm3, %v4429_v6  ;;  %4268 = vmatprep.mubr.msk.f32.mxu0 %vm4977_vm1, %v4978_v21 }
 0x620   : > { %4436 = vmatprep.subr.bf16.mxu0 %v4976_v20 }
 0x622   : > { %4262 = vmatmul.mubr.msk.f32.vlgmr.msra.gmra.mrb[36].mxu1 %vm730_vm2, %v2782_v1 }
 0x623   : > { %4435 = vmatpush3.bf16.xpose.msk.msra.mxu1 %vm5316_vm3, %v4433_v10  ;;  %4275 = vmatprep.mubr.msk.f32.mxu1 %vm4977_vm1, %v4978_v21 }
 0x624   : > { %4439 = vmatprep.subr.bf16.mxu1 %v4976_v20 }
 0x626   : > { %4269 = vmatmul.mubr.msk.f32.vlgmr.msra.gmra.mrb[30].mxu0 %vm730_vm2, %v2782_v1 }
 0x627   : > { %4438 = vmatpush3.bf16.msra.mxu0 %v4437_v16  ;;  %4282 = vmatprep.mubr.msk.f32.mxu0 %vm4977_vm1, %v4978_v21 }
 0x628   : > { %4442 = vmatprep.subr.bf16.mxu0 %v4976_v20 }
 0x62a   : > { %4276 = vmatmul.mubr.msk.f32.vlgmr.msra.gmra.mrb[38].mxu1 %vm730_vm2, %v2782_v1 }
 0x62b   : > { %4289 = vmatprep.mubr.msk.f32.mxu1 %vm4977_vm1, %v4978_v21 }
 0x6e0   : > { %v5599_v31 = vpop.f32.mrb[24].mxu0 }
 0x6e1   : > { %v4228_v18 = vpop.f32.mrb[25].mxu0 }
 0x6e4   : > { %v5601_v45 = vpop.f32.mrb[32].mxu1 }
 0x6e5   : > { %v4235_v22 = vpop.f32.mrb[33].mxu1 }
 0x6e8   : > { %v5603_v47 = vpop.f32.mrb[26].mxu0 }
 0x6e9   : > { %v4242_v23 = vpop.f32.mrb[27].mxu0 }
 0x6ec   : > { %v5605_v24 = vpop.f32.mrb[34].mxu1 }
 0x6ed   : > { %v4249_v60 = vpop.f32.mrb[35].mxu1 }
 0x6f1   : > { %v2859_v25 = vpop.f32.mrb[28].mxu0 }
 0x6f2   : > { %v3097_v36 = vsel %vm1038_vm4, %v2859_v25, -inf  ;;  %v4256_v26 = vpop.f32.mrb[29].mxu0 }
 0x6f3   : > { %3098 = vmax.xlane.f32.xlu1 %v3097_v36 }
 0x6f5   : > { %v2937_v27 = vpop.f32.mrb[36].mxu1 }
 0x6f6   : > { %v3100_v37 = vsel %vm1038_vm4, %v2937_v27, -inf  ;;  %v4263_v49 = vpop.f32.mrb[37].mxu1 }
 0x6f7   : > { %3101 = vmax.xlane.f32.xlu0 %v3100_v37  ;;  %v1063_v49 = vsel %vm1038_vm4, %v5395_v40, 0.0 }
 0x6f9   : > { %v3015_v29 = vpop.f32.mrb[30].mxu0 }
 0x6fa   : > { %v4270_v30 = vpop.f32.mrb[31].mxu0  ;;  %v3103_v32 = vsel %vm1038_vm4, %v3015_v29, -inf }
 0x6fb   : > { %3104 = vmax.xlane.f32.xlu0 %v3103_v32  ;;  %v1066_v30 = vsel %vm1038_vm4, %v5402_v43, 0.0 }
 0x6fd   : > { %v3093_v33 = vpop.f32.mrb[38].mxu1 }
 0x6fe   : > { %v4277_v35 = vpop.f32.mrb[39].mxu1  ;;  %v3106_v38 = vsel %vm1038_vm4, %v3093_v33, -inf }
 0x6ff   : > { %3107 = vmax.xlane.f32.xlu0 %v3106_v38 }
 0x704   : > { %4670 = vrot.lane.b32.xlu1 %v5371_v3, %s4981_s1  ;;  %v1722_v3 = vsel %vm1038_vm4, %v5479_v2, 0.0 }
 0x708   : > { %4675 = vrot.lane.b32.xlu1 %v5373_v8, %s4981_s1  ;;  %v2424_v8 = vsel %vm1038_vm4, %v5548_v28, 0.0 }
 0x715   : > { %4665 = vrot.lane.b32.xlu0 %v5368_v63, %s4981_s1  ;;  %v2427_v63 = vsel %vm1038_vm4, %v5555_v34, 0.0  ;;  %s3913_s1 = sshll.u32 %s5068_s21, 9  ;;  %s4985_s21 = smov [#allocation12]  }
 0x716   : > { %s5710_s13 = scalar_lea.hbm %s5799_s14, %s3913_s1  ;;  %s4897_s25 = sshll.u32 %s4985_s21, 4  ;;  %s4898_s25 = int_to_ptr.vmem [resolvable:$false] %s4897_s25 }
 0x717   : > { %s4899_s17 = scalar_lea.vmem %s4898_s25, 1024 }
 0x72c   : > { %1720 = vadd.xlane.f32.xlu1 %v1719_v39 }
 0x730   : > { %1726 = vadd.xlane.f32.xlu1 %v1725_v41 }
 0x734   : > { %2431 = vadd.xlane.f32.xlu1 %v2430_v50  ;;  %1723 = vadd.xlane.f32.xlu0 %v1722_v3 }
 0x738   : > { %2425 = vadd.xlane.f32.xlu0 %v2424_v8 }
 0x73c   : > { %2428 = vadd.xlane.f32.xlu0 %v2427_v63 }
 0x740   : > { %1729 = vadd.xlane.f32.xlu0 %v1728_v58 }
 0x744   : > { %2434 = vadd.xlane.f32.xlu0 %v2433_v9 }
 0x780   : > { %v3099_v44 = vpop.xlane.xlu1 %3098 }
 0x781   : > { %v3109_v2 = vsub.f32 %v2859_v25, %v3099_v44 }
 0x783   : > { %v3113_v52 = vmul.f32 1.442695, %v3109_v2 }
 0x784   : > { %v3102_v55 = vpop.xlane.xlu0 %3101  ;;  %v4671_v59 = vpop.permute.xlu1 %4670 }
 0x785   : > { %4703 = vpow2.f32 %v3113_v52  ;;  %v3110_v56 = vsub.f32 %v2937_v27, %v3102_v55  ;;  %v4673_v62 = vunpack.i.h.bf16 %v4671_v59  ;;  %v4672_v0 = vunpack.i.l.bf16 %v4671_v59 }
 0x787   : > { %v3115_v28 = vmul.f32 1.442695, %v3110_v56  ;;  %v4443_v57 = vpack.c.bf16 %v4673_v62, %v4672_v0 }
 0x788   : > { %v3105_v61 = vpop.xlane.xlu0 %3104  ;;  %v4676_v7 = vpop.permute.xlu1 %4675 }
 0x789   : > { %4705 = vpow2.f32 %v3115_v28  ;;  %v3111_v34 = vsub.f32 %v3015_v29, %v3105_v61  ;;  %v4678_v22 = vunpack.i.h.bf16 %v4676_v7  ;;  %v4677_v23 = vunpack.i.l.bf16 %v4676_v7 }
 0x78a   : > { %v1069_v29 = vsel %vm1038_vm4, %v5409_v48, 0.0 }
 0x78b   : > { %v3117_v1 = vmul.f32 1.442695, %v3111_v34  ;;  %v4446_v26 = vpack.c.bf16 %v4678_v22, %v4677_v23 }
 0x78c   : > { %v3108_v19 = vpop.xlane.xlu0 %3107 }
 0x78d   : > { %4707 = vpow2.f32 %v3117_v1  ;;  %v3112_v4 = vsub.f32 %v3093_v33, %v3108_v19 }
 0x78f   : > { %v4704_v5 = vpop.eup %4703  ;;  %v3119_v6 = vmul.f32 1.442695, %v3112_v4 }
 0x790   : > { %4283 = vmatmul.mubr.msk.f32.vlgmr.msra.gmra.mrb[32].mxu0 %vm1038_vm4, %v4704_v5  ;;  %v4666_v10 = vpop.permute.xlu0 %4665  ;;  %v3121_v12 = vsel %vm1038_vm4, %v4704_v5, 0.0 }
 0x791   : > { %4709 = vpow2.f32 %v3119_v6  ;;  %4444 = vmatpush3.bf16.msra.mxu0 %v4443_v57  ;;  %v4668_v14 = vunpack.i.h.bf16 %v4666_v10  ;;  %v4667_v16 = vunpack.i.l.bf16 %v4666_v10  ;;  %3122 = vadd.xlane.f32.xlu1 %v3121_v12 }
 0x792   : > { %4296 = vmatprep.mubr.msk.f32.mxu0 %vm4977_vm1, %v4978_v21 }
 0x793   : > { %v4706_v18 = vpop.eup %4705  ;;  %v4440_v60 = vpack.c.bf16 %v4668_v14, %v4667_v16  ;;  %v3483_v16 = vld [vmem:[#allocation11 + $0x8] sm:$0xff] }
 0x794   : > { %v3124_v25 = vsel %vm1038_vm4, %v4706_v18, 0.0 }
 0x795   : > { %3125 = vadd.xlane.f32.xlu0 %v3124_v25  ;;  %4441 = vmatpush3.bf16.msra.mxu1 %v4440_v60  ;;  %v3484_v60 = vld [vmem:[#allocation11 + $0x10] sm:$0xff]  ;;  %v3485_v25 = vld [vmem:[#allocation11 + $0x18] sm:$0xff] }
 0x796   : > { %4445 = vmatprep.subr.bf16.mxu1 %v4976_v20 }
 0x797   : > { %v4708_v36 = vpop.eup %4707 }
 0x798   : > { %4290 = vmatmul.mubr.msk.f32.vlgmr.msra.gmra.mrb[40].mxu1 %vm1038_vm4, %v4706_v18  ;;  %4297 = vmatmul.mubr.msk.f32.vlgmr.msra.gmra.mrb[34].mxu0 %vm1038_vm4, %v4708_v36  ;;  %v3127_v27 = vsel %vm1038_vm4, %v4708_v36, 0.0 }
 0x799   : > { %3128 = vadd.xlane.f32.xlu1 %v3127_v27  ;;  %4447 = vmatpush3.bf16.msra.mxu1 %v4446_v26  ;;  %v4452_v27 = vpack.c.bf16 %v3485_v25, %v3484_v60 }
 0x79a   : > { %4303 = vmatprep.mubr.msk.f32.mxu1 %vm4977_vm1, %v4978_v21  ;;  %v1072_v21 = vsel %vm1038_vm4, %v5417_v54, 0.0 }
 0x79b   : > { %v4710_v37 = vpop.eup %4709 }
 0x79c   : > { %4304 = vmatmul.mubr.msk.f32.vlgmr.msra.gmra.mrb[42].mxu1 %vm1038_vm4, %v4710_v37  ;;  %v3130_v20 = vsel %vm1038_vm4, %v4710_v37, 0.0 }
 0x79d   : > { %1064 = vadd.xlane.f32.xlu1 %v1063_v49  ;;  %3131 = vadd.xlane.f32.xlu0 %v3130_v20 }
 0x7a1   : > { %1070 = vadd.xlane.f32.xlu1 %v1069_v29  ;;  %1067 = vadd.xlane.f32.xlu0 %v1066_v30 }
 0x7a5   : > { %1073 = vadd.xlane.f32.xlu0 %v1072_v21 }
 0x7b9   : > { %v1721_v32 = vpop.xlane.xlu1 %1720 }
 0x7ba   : > { %4711 = vrcp.f32 %v1721_v32 }
 0x7bd   : > { %v1727_v39 = vpop.xlane.xlu1 %1726 }
 0x7c1   : > { %v1724_v33 = vpop.xlane.xlu0 %1723  ;;  %v2432_v41 = vpop.xlane.xlu1 %2431 }
 0x7c2   : > { %4713 = vrcp.f32 %v1724_v33 }
 0x7c4   : > { %v4712_v40 = vpop.eup %4711 }
 0x7c5   : > { %v2426_v35 = vpop.xlane.xlu0 %2425  ;;  %v2059_v38 = vmul.f32 %v4712_v40, %v5524_v42 }
 0x7c6   : > { %4715 = vrcp.f32 %v2426_v35 }
 0x7c7   : > { %2067 = vrot.lane.b32.xlu1 %v2059_v38, %s4982_s28 }
 0x7c9   : > { %v2429_v43 = vpop.xlane.xlu0 %2428 }
 0x7ca   : > { %4717 = vrcp.f32 %v2429_v43 }
 0x7cb   : > { %4719 = vrcp.f32 %v1727_v39 }
 0x7cc   : > { %v4714_v48 = vpop.eup %4713 }
 0x7cd   : > { %v1730_v54 = vpop.xlane.xlu0 %1729  ;;  %v2060_v50 = vmul.f32 %v4714_v48, %v5526_v46 }
 0x7ce   : > { %4721 = vrcp.f32 %v1730_v54 }
 0x7cf   : > { %4723 = vrcp.f32 %v2432_v41  ;;  %2069 = vrot.lane.b32.xlu0 %v2060_v50, %s4982_s28 }
 0x7d0   : > { %v4716_v3 = vpop.eup %4715 }
 0x7d1   : > { %v2435_v8 = vpop.xlane.xlu0 %2434  ;;  %v2756_v42 = vmul.f32 %v4716_v3, %v5599_v31 }
 0x7d2   : > { %4725 = vrcp.f32 %v2435_v8 }
 0x7d3   : > { %2764 = vrot.lane.b32.xlu1 %v2756_v42, %s4983_s12 }
 0x7d4   : > { %v4718_v63 = vpop.eup %4717 }
 0x7d5   : > { %v2757_v58 = vmul.f32 %v4718_v63, %v5601_v45  ;;  %v4720_v9 = vpop.eup %4719  ;;  %v3899_v63 = vld [vmem:[%s5765_s7] ss:$0 sm:$0xff] }
 0x7d6   : > { %v2061_v2 = vmul.f32 %v4720_v9, %v5528_v51  ;;  %v3590_v9 = vld [vmem:[%s5766_s8] sm:$0xff] }
 0x7d7   : > { %2766 = vrot.lane.b32.xlu1 %v2757_v58, %s4983_s12 }
 0x7d8   : > { %v4722_v44 = vpop.eup %4721 }
 0x7d9   : > { %v2062_v46 = vmul.f32 %v4722_v44, %v5530_v53  ;;  %v4724_v52 = vpop.eup %4723 }
 0x7da   : > { %v2758_v31 = vmul.f32 %v4724_v52, %v5603_v47 }
 0x7db   : > { %2071 = vrot.lane.b32.xlu1 %v2061_v2, %s4982_s28  ;;  %2073 = vrot.lane.b32.xlu0 %v2062_v46, %s4982_s28 }
 0x7dc   : > { %v4726_v55 = vpop.eup %4725 }
 0x7dd   : > { %v2759_v56 = vmul.f32 %v4726_v55, %v5605_v24 }
 0x7df   : > { %2768 = vrot.lane.b32.xlu1 %v2758_v31, %s4983_s12  ;;  %2770 = vrot.lane.b32.xlu0 %v2759_v56, %s4983_s12  ;;  %s3688_s12 = sshll.u32 %s461_s3, 4  ;;  %s5712_s12 = int_to_ptr.vmem [resolvable:$true] %s3688_s12 }
 0x7e0   : > { %s4893_s23 = scalar_lea.vmem %s5712_s12, 512  ;;  %p4900_p3 = scmp.lt.s32.totalorder %s5712_s12, %s4898_s25 }
 0x7e1   : > { %p4894_p4 = scmp.ne.s32.totalorder %s5712_s12, %s4893_s23  ;;  %p4901_p7 = scmp.lt.s32.totalorder %s4899_s17, %s4893_s23 }
 0x7e3   : > { %p4895_p6 = pnand %p4894_p4, %p5208_p1  ;;  %p4902_p10 = por %p4901_p7, %p4900_p3 }
 0x7e5   : > { %p4896_p8 = pneg %p4895_p6 }
 0x7e7   : > { %p4903_p13 = pnand %p4902_p10, %p4896_p8 }
 0x81e   : > { %v3123_v45 = vpop.xlane.xlu1 %3122 }
 0x822   : > { %v3126_v28 = vpop.xlane.xlu0 %3125 }
 0x826   : > { %v3129_v59 = vpop.xlane.xlu1 %3128 }
 0x82a   : > { %v1065_v61 = vpop.xlane.xlu1 %1064  ;;  %v3132_v34 = vpop.xlane.xlu0 %3131 }
 0x82b   : > { %4727 = vrcp.f32 %v1065_v61 }
 0x82e   : > { %v1071_v51 = vpop.xlane.xlu1 %1070  ;;  %v1068_v53 = vpop.xlane.xlu0 %1067 }
 0x82f   : > { %4729 = vrcp.f32 %v1071_v51 }
 0x830   : > { %4731 = vrcp.f32 %v1068_v53 }
 0x832   : > { %v1074_v62 = vpop.xlane.xlu0 %1073 }
 0x833   : > { %4733 = vrcp.f32 %v1074_v62 }
 0x834   : > { %4735 = vrcp.f32 %v3123_v45 }
 0x835   : > { %v4728_v0 = vpop.eup %4727  ;;  %4737 = vrcp.f32 %v3126_v28 }
 0x836   : > { %v1371_v1 = vmul.f32 %v4728_v0, %v5451_v11  ;;  %4739 = vrcp.f32 %v3129_v59 }
 0x837   : > { %4741 = vrcp.f32 %v3132_v34 }
 0x838   : > { %1375 = vst.msk [vmem:[#allocation2] sm:$0xff] %vm730_vm2, %v1371_v1 }
 0x839   : > { %v4730_v47 = vpop.eup %4729  ;;  %v2068_v24 = vpop.permute.xlu1 %2067 }
 0x83a   : > { %v4732_v19 = vpop.eup %4731  ;;  %v1373_v4 = vmul.f32 %v4730_v47, %v5455_v15  ;;  %2080 = vst.msk [vmem:[#allocation2] sm:$0xff] %vm2079_vm5, %v2068_v24 }
 0x83b   : > { %v1372_v5 = vmul.f32 %v4732_v19, %v5453_v13 }
 0x83c   : > { %1377 = vst.msk [vmem:[#allocation2 + $0x10] sm:$0xff] %vm730_vm2, %v1373_v4 }
 0x83d   : > { %v4734_v57 = vpop.eup %4733  ;;  %1376 = vst.msk [vmem:[#allocation2 + $0x8] sm:$0xff] %vm730_vm2, %v1372_v5 }
 0x83e   : > { %v1374_v6 = vmul.f32 %v4734_v57, %v5457_v17  ;;  %v3482_v17 = vld [vmem:[#allocation11] sm:$0xff]  ;;  %v4736_v22 = vpop.eup %4735 }
 0x83f   : > { %v4448_v18 = vpack.c.bf16 %v3483_v16, %v3482_v17  ;;  %v4738_v37 = vpop.eup %4737 }
 0x840   : > { %1378 = vst.msk [vmem:[#allocation2 + $0x18] sm:$0xff] %vm730_vm2, %v1374_v6  ;;  %v4740_v49 = vpop.eup %4739 }
 0x841   : > { %v2070_v11 = vpop.permute.xlu0 %2069  ;;  %4449 = vmatprep.subr.bf16.mxu0 %v4448_v18  ;;  %v4742_v40 = vpop.eup %4741 }
 0x842   : > { %2081 = vst.msk [vmem:[#allocation2 + $0x8] sm:$0xff] %vm2079_vm5, %v2070_v11  ;;  %4451 = vmatpush3.bf16.msra.mxu0 %v4448_v18 }
 0x843   : > { %4453 = vmatprep.subr.bf16.mxu0 %v4452_v27 }
 0x845   : > { %v2765_v7 = vpop.permute.xlu1 %2764 }
 0x846   : > { %2777 = vst.msk [vmem:[#allocation2] sm:$0xff] %vm2776_vm6, %v2765_v7  ;;  %4455 = vmatpush3.bf16.msra.mxu0 %v4452_v27 }
 0x849   : > { %v2767_v15 = vpop.permute.xlu1 %2766 }
 0x84a   : > { %2778 = vst.msk [vmem:[#allocation2 + $0x8] sm:$0xff] %vm2776_vm6, %v2767_v15 }
 0x84d   : > { %v2072_v10 = vpop.permute.xlu1 %2071  ;;  %v2074_v12 = vpop.permute.xlu0 %2073 }
 0x84e   : > { %2082 = vst.msk [vmem:[#allocation2 + $0x10] sm:$0xff] %vm2079_vm5, %v2072_v10  ;;  %2083 = vst.msk [vmem:[#allocation2 + $0x18] sm:$0xff] %vm2079_vm5, %v2074_v12 }
 0x851   : > { %v2769_v13 = vpop.permute.xlu1 %2768  ;;  %v2771_v14 = vpop.permute.xlu0 %2770 }
 0x852   : > { %2779 = vst.msk [vmem:[#allocation2 + $0x10] sm:$0xff] %vm2776_vm6, %v2769_v13  ;;  %2780 = vst.msk [vmem:[#allocation2 + $0x18] sm:$0xff] %vm2776_vm6, %v2771_v14 }
 0x863   : > { %v3208_v23 = vpop.f32.mrb[32].mxu0 }
 0x864   : > { %v3453_v36 = vmul.f32 %v4736_v22, %v3208_v23  ;;  %v4284_v26 = vpop.f32.mrb[33].mxu0 }
 0x866   : > { %3461 = vrot.lane.b32.xlu1 %v3453_v36, %s4984_s16 }
 0x86b   : > { %v3287_v20 = vpop.f32.mrb[40].mxu1  ;;  %v3366_v29 = vpop.f32.mrb[34].mxu0 }
 0x86c   : > { %v3454_v30 = vmul.f32 %v4738_v37, %v3287_v20  ;;  %v3455_v21 = vmul.f32 %v4740_v49, %v3366_v29  ;;  %v4291_v32 = vpop.f32.mrb[41].mxu1  ;;  %v4298_v33 = vpop.f32.mrb[35].mxu0 }
 0x86d   : > { %v3904_v33 = vld [vmem:[%s5767_s9] ss:$0 sm:$0xff] }
 0x86e   : > { %3463 = vrot.lane.b32.xlu0 %v3454_v30, %s4984_s16  ;;  %3465 = vrot.lane.b32.xlu1 %v3455_v21, %s4984_s16 }
 0x86f   : > { %v3445_v35 = vpop.f32.mrb[42].mxu1 }
 0x870   : > { %v3456_v38 = vmul.f32 %v4742_v40, %v3445_v35  ;;  %v4305_v39 = vpop.f32.mrb[43].mxu1 }
 0x872   : > { %3467 = vrot.lane.b32.xlu0 %v3456_v38, %s4984_s16  ;;  %v3905_v38 = vld [vmem:[%s5768_s10] ss:$0 sm:$0xff] }
 0x8d8   : > { %v3462_v43 = vpop.permute.xlu1 %3461 }
 0x8d9   : > { %3474 = vst.msk [vmem:[#allocation2] sm:$0xff] %vm3473_vm7, %v3462_v43 }
 0x8e0   : > { %v3464_v48 = vpop.permute.xlu0 %3463  ;;  %v3466_v41 = vpop.permute.xlu1 %3465  ;;  %v3478_v54 = vld [vmem:[#allocation2] sm:$0xff] }
 0x8e1   : > { %3475 = vst.msk [vmem:[#allocation2 + $0x8] sm:$0xff] %vm3473_vm7, %v3464_v48  ;;  %3476 = vst.msk [vmem:[#allocation2 + $0x10] sm:$0xff] %vm3473_vm7, %v3466_v41  ;;  %4314 = vmatprep.mubr.msk.f32.mxu0 %vm483_vm0, %v3478_v54 }
 0x8e4   : > { %v3468_v50 = vpop.permute.xlu0 %3467 }
 0x8e5   : > { %3477 = vst.msk [vmem:[#allocation2 + $0x18] sm:$0xff] %vm3473_vm7, %v3468_v50 }
 0x8e8   : > { %v3479_v3 = vld [vmem:[#allocation2 + $0x8] sm:$0xff]  ;;  %v3480_v8 = vld [vmem:[#allocation2 + $0x10] sm:$0xff] }
 0x8e9   : > { %4315 = vmatmul.mubr.msk.f32.vlgmr.msra.gmra.mrb[36].mxu0 %vm483_vm0, %v3479_v3 }
 0x8ea   : > { %4317 = vmatprep.mubr.msk.f32.mxu0 %vm483_vm0, %v3480_v8 }
 0x8ec   : > { %v3481_v42 = vld [vmem:[#allocation2 + $0x18] sm:$0xff] }
 0x8ed   : > { %4318 = vmatmul.mubr.msk.f32.gmra.mrb[38].mxu0 %vm483_vm0, %v3481_v42 }
 0x9bc   : > { %v4316_v58 = vpop.f32.mrb[36].mxu0 }
 0x9bd   : > { %v3577_v44 = vadd.f32 %v4316_v58, %v3899_v63  ;;  %v3571_v2 = vpop.f32.mrb[37].mxu0 }
 0x9be   : > { %v3572_v46 = vadd.f32 %v3899_v63, %v3571_v2 }
 0x9bf   : > { %v3592_v52 = vadd.f32 %v3590_v9, %v3577_v44 }
 0x9c0   : > { %v4319_v55 = vpop.f32.mrb[38].mxu0  ;;  %v3591_v31 = vadd.f32 %v3590_v9, %v3572_v46 }
 0x9c1   : > { %v3581_v56 = vpop.f32.mrb[39].mxu0  ;;  %v3598_v45 = vsel %vm483_vm0, %v3592_v52, 0.0  ;;  %v3587_v28 = vadd.f32 %v4319_v55, %v3899_v63 }
 0x9c2   : > { %v3582_v59 = vadd.f32 %v3899_v63, %v3581_v56  ;;  %3599 = vadd.xlane.f32.xlu0 %v3598_v45  ;;  %v3595_v61 = vsel %vm483_vm0, %v3591_v31, 0.0 }
 0x9c3   : > { %3596 = vadd.xlane.f32.xlu1 %v3595_v61  ;;  %v3594_v53 = vadd.f32 %v3590_v9, %v3587_v28 }
 0x9c4   : > { %v3593_v34 = vadd.f32 %v3590_v9, %v3582_v59 }
 0x9c5   : > { %v3604_v62 = vsel %vm483_vm0, %v3594_v53, 0.0 }
 0x9c6   : > { %v3601_v51 = vsel %vm483_vm0, %v3593_v34, 0.0 }
 0x9c7   : > { %3602 = vadd.xlane.f32.xlu0 %v3601_v51 }
 0x9cb   : > { %3605 = vadd.xlane.f32.xlu0 %v3604_v62 }
 0xa4f   : > { %v3600_v0 = vpop.xlane.xlu0 %3599 }
 0xa50   : > { %v3609_v1 = vmul.f32 0.03125, %v3600_v0  ;;  %v3597_v47 = vpop.xlane.xlu1 %3596 }
 0xa51   : > { %v3608_v24 = vmul.f32 0.03125, %v3597_v47 }
 0xa52   : > { %v3613_v19 = vsub.f32 %v3592_v52, %v3609_v1 }
 0xa53   : > { %v3612_v4 = vsub.f32 %v3591_v31, %v3608_v24 }
 0xa54   : > { %v3603_v5 = vpop.xlane.xlu0 %3602  ;;  %v3617_v57 = vmul.f32 %v3613_v19, %v3613_v19 }
 0xa55   : > { %v3610_v6 = vmul.f32 0.03125, %v3603_v5  ;;  %v3616_v11 = vmul.f32 %v3612_v4, %v3612_v4 }
 0xa56   : > { %v3623_v7 = vsel %vm483_vm0, %v3617_v57, 0.0 }
 0xa57   : > { %v3614_v15 = vsub.f32 %v3593_v34, %v3610_v6  ;;  %3624 = vadd.xlane.f32.xlu0 %v3623_v7  ;;  %v3620_v10 = vsel %vm483_vm0, %v3616_v11, 0.0 }
 0xa58   : > { %v3606_v12 = vpop.xlane.xlu0 %3605  ;;  %3621 = vadd.xlane.f32.xlu1 %v3620_v10 }
 0xa59   : > { %v3611_v13 = vmul.f32 0.03125, %v3606_v12  ;;  %v3618_v14 = vmul.f32 %v3614_v15, %v3614_v15 }
 0xa5b   : > { %v3615_v17 = vsub.f32 %v3594_v53, %v3611_v13  ;;  %v3626_v16 = vsel %vm483_vm0, %v3618_v14, 0.0 }
 0xa5c   : > { %3627 = vadd.xlane.f32.xlu1 %v3626_v16 }
 0xa5d   : > { %v3619_v18 = vmul.f32 %v3615_v17, %v3615_v17 }
 0xa5f   : > { %v3629_v22 = vsel %vm483_vm0, %v3619_v18, 0.0 }
 0xa60   : > { %3630 = vadd.xlane.f32.xlu0 %v3629_v22 }
 0xae4   : > { %v3625_v23 = vpop.xlane.xlu0 %3624 }
 0xae5   : > { %v3633_v60 = vmul.f32 0.03125, %v3625_v23  ;;  %v3622_v25 = vpop.xlane.xlu1 %3621 }
 0xae6   : > { %v3632_v36 = vmul.f32 0.03125, %v3622_v25 }
 0xae7   : > { %v3637_v26 = vadd.f32 1e-05, %v3633_v60 }
 0xae8   : > { %v3636_v27 = vadd.f32 1e-05, %v3632_v36 }
 0xae9   : > { %4743 = vrsqrt.f32 %v3637_v26  ;;  %v3628_v37 = vpop.xlane.xlu1 %3627 }
 0xaea   : > { %4745 = vrsqrt.f32 %v3636_v27  ;;  %v3634_v49 = vmul.f32 0.03125, %v3628_v37 }
 0xaec   : > { %v3638_v20 = vadd.f32 1e-05, %v3634_v49 }
 0xaed   : > { %v3631_v29 = vpop.xlane.xlu0 %3630 }
 0xaee   : > { %4747 = vrsqrt.f32 %v3638_v20  ;;  %v3635_v30 = vmul.f32 0.03125, %v3631_v29 }
 0xaf0   : > { %v3639_v21 = vadd.f32 1e-05, %v3635_v30 }
 0xaf2   : > { %4749 = vrsqrt.f32 %v3639_v21 }
 0xaf3   : > { %v4744_v32 = vpop.eup %4743 }
 0xaf4   : > { %v4746_v40 = vpop.eup %4745  ;;  %v3645_v35 = vmul.f32 %v4744_v32, %v3613_v19 }
 0xaf5   : > { %v3644_v39 = vmul.f32 %v4746_v40, %v3612_v4 }
 0xaf6   : > { %v3656_v43 = vmul.f32 %v3904_v33, %v3645_v35 }
 0xaf7   : > { %v3655_v48 = vmul.f32 %v3904_v33, %v3644_v39 }
 0xaf8   : > { %v4748_v41 = vpop.eup %4747  ;;  %v3667_v54 = vadd.f32 %v3905_v38, %v3656_v43 }
 0xaf9   : > { %v3666_v50 = vadd.f32 %v3905_v38, %v3655_v48  ;;  %v3646_v3 = vmul.f32 %v4748_v41, %v3614_v15 }
 0xafa   : > { %3671 = vst.msk [vmem:[%s461_s3 + $0x8] sm:$0xff] %vm483_vm0, %v3667_v54 }
 0xafb   : > { %v3657_v8 = vmul.f32 %v3904_v33, %v3646_v3  ;;  %3670 = vst.msk [vmem:[%s461_s3] sm:$0xff] %vm483_vm0, %v3666_v50 }
 0xafc   : > { %v4750_v42 = vpop.eup %4749 }
 0xafd   : > { %v3668_v63 = vadd.f32 %v3905_v38, %v3657_v8  ;;  %v3647_v58 = vmul.f32 %v4750_v42, %v3615_v17 }
 0xaff   : > { %3672 = vst.msk [vmem:[%s461_s3 + $0x10] sm:$0xff] %vm483_vm0, %v3668_v63  ;;  %v3658_v9 = vmul.f32 %v3904_v33, %v3647_v58 }
 0xb01   : > { %v3669_v44 = vadd.f32 %v3905_v38, %v3658_v9 }
 0xb03   : > { %3673 = vst.msk [vmem:[%s461_s3 + $0x18] sm:$0xff] %vm483_vm0, %v3669_v44 }
 0xb04   : > { %4906 = shalt.err (!%p4903_p13)
}
 0xb05   : > { %s4907_s11 = scalar_lea.hbm %s5710_s13, 512  ;;  %s4911_s1 = scalar_lea.hbm %s5799_s14, 1024 }
 0xb06   : > { %p4908_p0 = scmp.ne.s32.totalorder %s5710_s13, %s4907_s11  ;;  %p4912_p9 = scmp.lt.u32.totalorder %s5710_s13, %s5799_s14 }
 0xb07   : > { %p4913_p12 = scmp.lt.u32.totalorder %s4911_s1, %s4907_s11  ;;  %p4915_p4 = scmp.lt.u32.totalorder %s4907_s11, %s5710_s13 }
 0xb08   : > { %p4909_p5 = pnand %p4908_p0, %p5208_p1 }
 0xb09   : > { %p4914_p2 = por %p4913_p12, %p4912_p9 }
 0xb0a   : > { %p4910_p11 = pneg %p4909_p5 }
 0xb0b   : > { %p4916_p6 = por %p4915_p4, %p4914_p2 }
 0xb0d   : > { %p4917_p8 = pnand %p4916_p6, %p4910_p11 }
 0xb0f   : > { %4920 = shalt.err (!%p4917_p8)
}
 0xb10   : > { %s4986_s23 = smov 128  }
 0xb11   : > { %4478 = dma.vmem_to_hbm [thread:$0]  (%p5208_p1), %s5712_s12, 512, %s5710_s13, %s3675_s29, %s4986_s23, %s4986_s23, %s4982_s28  }
 0xb12 PF: > { %s5800_s21 = sld [smem:[#allocation17_spill]]  ;;  %s5801_s25 = sld [smem:[#allocation18_spill]] }
 0xb13   : > { %p5803_p7 = scmp.ge.s32.totalorder %s4967_s20, 2 }
 0xb18   : > { %s3703_s17 = sand.u32 1, %s5800_s21   ;;  %p5802_p3 = scmp.ne.s32.totalorder %s5801_s25, 0 }
 0xb19   : > { %s3704_s11 = scalar_lea.sflag [#allocation5], %s3703_s17 }
 0xb1a   : > { %p4498_p10 = pnand %p5803_p7, %p5802_p3 }
 0xb1c   : > { %4950 = dma.done.wait (!%p4498_p10), %s3704_s11, 512  }
 0xb1d   : > { %4952 = vsyncadd (!%p4498_p10), %s3704_s11, 4294966784  ;;  %p26_p13 = scmp.ge.s32.totalorder %s5198_s24, 4   ;;  %s5804_s17 = smov %s4959_s18 }
 0xb1e   : > { %s5805_s18 = smov %s4963_s19  ;;  %s5806_s19 = smov %s5214_s26 }
 0xb1f   : > { %s5807_s20 = smov %s5198_s24  ;;  %28 = sbr.rel (!%p26_p13) target bundleno = 11 (0xb), region = 125 }
 0xb26   :  { %3709 = vsyncpa [#allocation4], 1 }
 0xb27   :  { %3711 = vsyncpa [#allocation4 + $0x1], 1 }
 0xb28   :  { %3712 = vsyncpa [#allocation7], 1 }
 0xb29   :  { %3713 = vsyncpa [#allocation10], 1 }
 0xb2a   :  { %3714 = vsyncpa [#allocation5], 1 }
 0xb2b   :  { %3716 = vsyncpa [#allocation5 + $0x1], 1 }

</bundles_post_ra>
